<compile_context>
chip_gen: v5e
topology: v5e:2x2
jax: 0.10.0
libtpu: 0.0.40
codegen_flags: <defaults>
</compile_context>

<pallas_src>
import functools
import math

import numpy as np
import jax
import jax.numpy as jnp
from jax.experimental import pallas as pl
from jax.experimental.pallas import tpu as pltpu

PRIMITIVES_DEEPNETS1M = [
    "input", "conv", "sep_conv", "dil_conv", "linear", "bias", "bn", "ln",
    "max_pool", "avg_pool", "sum", "concat", "msa", "pos_enc", "glob_avg",
]


def _round_up(x, m):
    return ((x + m - 1) // m) * m


# -----------------------------------------------------------------------------
# Fused Pallas kernel
#   grid = (phase, kc_tile); phase 0 = encoders + GCN + LN + lin/bias decoders
#                            phase 1 = conv decoder (one lane-dense Kc tile/step)
# -----------------------------------------------------------------------------


def _ghn_fused_kernel(
    # inputs -------------------------------------------------------------------
    conv_in_ref,      # (Mc, TKc)   bf16   conv weight rows (Kc tile)
    conv_enc_w_ref,   # (TKc, Fp)   bf16   conv encoder weight (Kc tile)
    conv_dec_w_ref,   # (Fp, TKc)   bf16   conv decoder weight (Kc tile)
    conv_dec_b_ref,   # (1, TKc)    f32    conv decoder bias (Kc tile)
    lin_in_ref,       # (Ml, Kl)    bf16
    bias_in_ref,      # (Mb, Kb)    bf16
    lb_enc_w_ref,     # (Kl+Kb, Fp) bf16   [linear_enc_w ; bias_enc_w]
    lb_dec_w_ref,     # (Fp, Kl+Kb) bf16   [linear_dec_w , bias_dec_w]
    lb_dec_b_ref,     # (1, Kl+Kb)  f32
    s_all_ref,        # (Np, Mtot)  f32    one-hot scatter node<-encoder-row
    base_ref,         # (Np, Fp)    f32    ones row + layer embeddings
    anorm_ref,        # (Np, Np)    f32    D^-1/2 (A+I) D^-1/2 (precomputed)
    gcn_w_ref,        # (2Fp, Fp)   f32    [gcn_w1 ; gcn_w2]
    smalls_ref,       # (8, Fp)     f32    packed tiny rows (see layout below)
    # outputs ------------------------------------------------------------------
    dec_conv_ref,     # (Mc, TKc)   f32
    dec_lin_ref,      # (Ml, Kl)    f32
    dec_bias_ref,     # (Mb, Kb)    f32
    # scratch ------------------------------------------------------------------
    acc_ref,          # (Mc, Fp)    f32    conv-encoder accumulator
    xg_ref,           # (Mc, Fp)    bf16   gathered conv node features
    *, hid, Kl, Fp, Mc, Ml, use_layernorm,
):
    # smalls row layout: 0 conv_enc_b, 1 lin_enc_b, 2 bias_enc_b,
    #                    3 gcn_b1, 4 gcn_b2, 5 ln_g, 6 ln_b, 7 zeros
    f32 = jnp.float32
    p = pl.program_id(0)
    k = pl.program_id(1)
    nk = pl.num_programs(1)

    def dot(a, b):
        return jnp.dot(a, b, preferred_element_type=f32)

    # ---------------- phase 0: conv-encoder reduction over Kc tiles -----------
    @pl.when(jnp.logical_and(p == 0, k == 0))
    def _init():
        acc_ref[...] = jnp.zeros_like(acc_ref)

    @pl.when(p == 0)
    def _enc_conv_tile():
        acc_ref[...] += dot(conv_in_ref[...], conv_enc_w_ref[...])

    # ------- phase 0, last Kc tile: small encoders, GCN, LN, small decoders ---
    @pl.when(jnp.logical_and(p == 0, k == nk - 1))
    def _gcn_and_small_decoders():
        smalls = smalls_ref[...]
        enc_c = acc_ref[...] + smalls[0:1, :]
        enc_l = dot(lin_in_ref[...], lb_enc_w_ref[:Kl, :]) + smalls[1:2, :]
        enc_b = dot(bias_in_ref[...], lb_enc_w_ref[Kl:, :]) + smalls[2:3, :]
        enc_all = jnp.concatenate([enc_c, enc_l, enc_b], axis=0)      # (Mtot,Fp)

        # scatter encoder rows onto node rows + ones row + layer embeddings
        s_all = s_all_ref[...]
        feat = base_ref[...] + dot(s_all, enc_all)

        # 2-layer GCN; symmetric-normalized adjacency precomputed on host.
        A = anorm_ref[...]
        gw = gcn_w_ref[...]
        h = jnp.maximum(dot(dot(A, feat), gw[:Fp, :]) + smalls[3:4, :], 0.0)
        x = dot(dot(A, h), gw[Fp:, :]) + smalls[4:5, :]

        if use_layernorm:
            # Invariant: padded feature columns of x are exactly zero because
            # gcn_w2 / gcn_b2 are zero-padded, so unmasked sums over Fp columns
            # equal the sums over the first 2*hid (real) columns.  ln_g / ln_b
            # are zero-padded, so padded columns stay zero after LN.
            inv_f = 1.0 / float(2 * hid)
            mu = jnp.sum(x, axis=-1, keepdims=True) * inv_f
            var = jnp.sum(x * x, axis=-1, keepdims=True) * inv_f - mu * mu
            x = (x - mu) * jax.lax.rsqrt(var + 1e-5) * smalls[5:6, :] + smalls[6:7, :]

        # gather per-class node features: s_all^T @ x (transposed operand is
        # handled by the MXU; no host-side transposed copy of s_all needed).
        xall = jax.lax.dot_general(s_all, x, (((0,), (0,)), ((), ())),
                                   preferred_element_type=f32)
        xg_ref[...] = xall[:Mc].astype(xg_ref.dtype)          # conv nodes, bf16
        xl = xall[Mc:Mc + Ml].astype(jnp.bfloat16)
        xb = xall[Mc + Ml:].astype(jnp.bfloat16)

        dec_lin_ref[...] = dot(xl, lb_dec_w_ref[:, :Kl]) + lb_dec_b_ref[0:1, :Kl]
        dec_bias_ref[...] = dot(xb, lb_dec_w_ref[:, Kl:]) + lb_dec_b_ref[0:1, Kl:]

    # ---------------- phase 1: conv decoder, one lane-dense Kc tile per step --
    @pl.when(p == 1)
    def _dec_conv_tile():
        dec_conv_ref[...] = (dot(xg_ref[...], conv_dec_w_ref[...])
                             + conv_dec_b_ref[...])


# -----------------------------------------------------------------------------
# Host-side packing / graph preprocessing (cacheable across forward calls)
# -----------------------------------------------------------------------------


def _init_linear(key, fan_in, fan_out):
    """PyTorch nn.Linear-style uniform init; weight stored as (in, out)."""
    kw, kb = jax.random.split(key)
    bound = 1.0 / (fan_in ** 0.5)
    w = jax.random.uniform(kw, (fan_in, fan_out), jnp.float32, -bound, bound)
    b = jax.random.uniform(kb, (fan_out,), jnp.float32, -bound, bound)
    return w, b


def init_ghn_params(key, max_shape, hid):
    conv_flat = max_shape[0] * max_shape[1] * max_shape[2] * max_shape[3]
    lin_flat = max_shape[0] * max_shape[1]
    keys = jax.random.split(key, 10)
    p = {}
    p["conv_enc_w"], p["conv_enc_b"] = _init_linear(keys[0], conv_flat, hid)
    p["conv_dec_w"], p["conv_dec_b"] = _init_linear(keys[1], 2 * hid, conv_flat)
    p["linear_enc_w"], p["linear_enc_b"] = _init_linear(keys[2], lin_flat, hid)
    p["linear_dec_w"], p["linear_dec_b"] = _init_linear(keys[3], 2 * hid, lin_flat)
    p["bias_enc_w"], p["bias_enc_b"] = _init_linear(keys[4], max_shape[0], hid)
    p["bias_dec_w"], p["bias_dec_b"] = _init_linear(keys[5], 2 * hid, max_shape[0])
    p["layer_embed"] = jax.random.normal(
        keys[6], (len(PRIMITIVES_DEEPNETS1M) + 1, hid), jnp.float32)
    p["gcn_w1"], p["gcn_b1"] = _init_linear(keys[7], 2 * hid, 2 * hid)
    p["gcn_w2"], p["gcn_b2"] = _init_linear(keys[8], 2 * hid, 2 * hid)
    p["ln_g"] = jnp.ones((2 * hid,), jnp.float32)
    p["ln_b"] = jnp.zeros((2 * hid,), jnp.float32)
    return p


def _normalize(p, is_w):
    """Fan-in normalization of a predicted tensor (only used if weight_norm)."""
    if p.ndim > 1:
        sz = p.shape
        no_relu = len(sz) > 2 and (sz[1] == 1 or sz[2] < sz[3])
        beta = 1.0 if no_relu else 2.0
        return p * (beta / p[0].size) ** 0.5
    elif is_w:
        return 2.0 * jax.nn.sigmoid(0.5 * p)
    else:
        return jnp.tanh(0.2 * p)


def _pad2(w, rows, cols):
    return jnp.pad(w.astype(jnp.float32),
                   ((0, rows - w.shape[0]), (0, cols - w.shape[1])))


def _pad_row(b, cols):
    b = b.astype(jnp.float32).reshape(1, -1)
    return jnp.pad(b, ((0, 0), (0, cols - b.shape[1])))


def pack_ghn_params(params, max_shape, hid, tkc_max=2048):
    """Pad / pack / cast GHN parameters into kernel layouts.

    Graph- and data-independent: compute once and reuse across forward calls.
    Large streaming operands are bf16 (f32 accumulation in-kernel); the 7 tiny
    (1, Fp) rows are packed into one (8, Fp) block (single DMA).
    All padding is with zeros — the kernel relies on that invariant.
    """
    conv_flat = max_shape[0] * max_shape[1] * max_shape[2] * max_shape[3]
    lin_flat = max_shape[0] * max_shape[1]
    bias_flat = max_shape[0]
    Fp = _round_up(2 * hid, 128)
    Kc = _round_up(conv_flat, 128)
    if Kc <= tkc_max:
        TKc = Kc
    else:
        TKc = tkc_max
        Kc = _round_up(conv_flat, TKc)
    Kl = _round_up(lin_flat, 128)
    Kb = _round_up(bias_flat, 128)
    bf16 = jnp.bfloat16

    smalls = jnp.zeros((8, Fp), jnp.float32)
    for i, r in enumerate([params["conv_enc_b"], params["linear_enc_b"],
                           params["bias_enc_b"], params["gcn_b1"],
                           params["gcn_b2"], params["ln_g"], params["ln_b"]]):
        smalls = smalls.at[i, :r.shape[0]].set(r.astype(jnp.float32))

    packed = {
        "conv_enc_w": _pad2(params["conv_enc_w"], Kc, Fp).astype(bf16),
        "conv_dec_w": _pad2(params["conv_dec_w"], Fp, Kc).astype(bf16),
        "conv_dec_b": _pad_row(params["conv_dec_b"], Kc),
        "lb_enc_w": jnp.concatenate(
            [_pad2(params["linear_enc_w"], Kl, Fp),
             _pad2(params["bias_enc_w"], Kb, Fp)], axis=0).astype(bf16),
        "lb_dec_w": jnp.concatenate(
            [_pad2(params["linear_dec_w"], Fp, Kl),
             _pad2(params["bias_dec_w"], Fp, Kb)], axis=1).astype(bf16),
        "lb_dec_b": jnp.concatenate(
            [_pad_row(params["linear_dec_b"], Kl),
             _pad_row(params["bias_dec_b"], Kb)], axis=1),
        "gcn_w": jnp.concatenate(
            [_pad2(params["gcn_w1"], Fp, Fp),
             _pad2(params["gcn_w2"], Fp, Fp)], axis=0),
        "smalls": smalls,
        "layer_embed": params["layer_embed"].astype(jnp.float32),
    }
    dims = {"conv_flat": conv_flat, "lin_flat": lin_flat, "bias_flat": bias_flat,
            "Kc": Kc, "TKc": TKc, "Kl": Kl, "Kb": Kb, "Fp": Fp, "hid": hid,
            "max_shape": tuple(max_shape)}
    return packed, dims


def build_graph_static(graph, data, packed, dims):
    """Graph-static artifacts (node classification, one-hot scatter matrix,
    base features, normalized adjacency).  Only the shapes of `data` are used,
    so this can be cached across forward calls that reuse the same graph."""
    n_nodes = graph["n_nodes"]
    node_params = graph["node_params"]
    adj = graph["adj"]
    hid, Fp = dims["hid"], dims["Fp"]
    Np = _round_up(max(n_nodes, 1), 8)

    conv_keys, conv_nodes = [], []
    lin_keys, lin_nodes = [], []
    bias_keys, bias_nodes = [], []
    prim_inds = []
    for ind, (name, pkey) in enumerate(node_params[1:]):
        node = ind + 1
        if pkey is not None and pkey in data:
            nd = data[pkey].ndim
            if nd == 4:
                conv_nodes.append(node); conv_keys.append(pkey)
            elif nd == 2:
                lin_nodes.append(node); lin_keys.append(pkey)
            elif nd == 1:
                bias_nodes.append(node); bias_keys.append(pkey)
        prim_inds.append(
            PRIMITIVES_DEEPNETS1M.index(name)
            if name in PRIMITIVES_DEEPNETS1M else len(PRIMITIVES_DEEPNETS1M))

    # 16-row alignment so bf16 weight-row blocks are natively (16,128)-tiled.
    Mc = _round_up(max(len(conv_nodes), 1), 16)
    Ml = _round_up(max(len(lin_nodes), 1), 16)
    Mb = _round_up(max(len(bias_nodes), 1), 16)

    # Combined one-hot scatter matrix (node <- stacked encoder row).
    # TODO(synk): for graphs with hundreds of parameter tensors, replace the
    #             one-hot matmul scatter/gather with an index gather
    #             (scalar prefetch + pl.Element) — O(M*Fp) instead of O(Np*M*Fp).
    s_all = jnp.zeros((Np, Mc + Ml + Mb), jnp.float32)
    for off, nodes in ((0, conv_nodes), (Mc, lin_nodes), (Mc + Ml, bias_nodes)):
        if nodes:
            s_all = s_all.at[jnp.array(nodes),
                             off + jnp.arange(len(nodes))].set(1.0)

    # base node features: ones for node 0, layer embedding in cols [hid:2hid].
    base = jnp.zeros((Np, Fp), jnp.float32)
    base = base.at[0, :2 * hid].set(1.0)
    if n_nodes > 1:
        emb = packed["layer_embed"][jnp.array(prim_inds)]
        base = base.at[jnp.arange(1, n_nodes), hid:2 * hid].set(emb)

    # symmetric-normalized adjacency D^-1/2 (A+I) D^-1/2, precomputed once.
    A = (adj == 1).astype(jnp.float32) + jnp.eye(n_nodes, dtype=jnp.float32)
    deg = A.sum(axis=1)
    dinv = jnp.where(deg > 0, jax.lax.rsqrt(jnp.maximum(deg, 1e-12)), 0.0)
    An = (dinv[:, None] * A) * dinv[None, :]
    a_norm = jnp.zeros((Np, Np), jnp.float32).at[:n_nodes, :n_nodes].set(An)

    return {"s_all": s_all, "base": base, "a_norm": a_norm,
            "conv_keys": conv_keys, "lin_keys": lin_keys, "bias_keys": bias_keys,
            "Mc": Mc, "Ml": Ml, "Mb": Mb, "Np": Np}


def build_weight_rows(data, static, dims):
    """Zero-pad + flatten the target parameter tensors into stacked bf16 rows
    (the only per-`data` preprocessing; everything else is cacheable)."""
    max_shape = dims["max_shape"]
    Kc, Kl, Kb = dims["Kc"], dims["Kl"], dims["Kb"]
    conv_flat, lin_flat, bias_flat = (dims["conv_flat"], dims["lin_flat"],
                                      dims["bias_flat"])

    def conv_row(w):
        buf = jnp.zeros(max_shape, jnp.float32)
        buf = buf.at[:w.shape[0], :w.shape[1], :w.shape[2], :w.shape[3]].set(w)
        return jnp.pad(buf.reshape(-1), (0, Kc - conv_flat))

    def lin_row(w):
        buf = jnp.zeros(max_shape[:2], jnp.float32)
        buf = buf.at[:w.shape[0], :w.shape[1]].set(w)
        return jnp.pad(buf.reshape(-1), (0, Kl - lin_flat))

    def bias_row(w):
        buf = jnp.zeros((bias_flat,), jnp.float32).at[:w.shape[0]].set(w)
        return jnp.pad(buf, (0, Kb - bias_flat))

    def stack(keys, fn, m_pad, k_pad):
        if keys:
            arr = jnp.stack([fn(data[k].astype(jnp.float32)) for k in keys])
            arr = jnp.pad(arr, ((0, m_pad - arr.shape[0]), (0, 0)))
        else:
            arr = jnp.zeros((m_pad, k_pad), jnp.float32)
        return arr.astype(jnp.bfloat16)

    conv_in = stack(static["conv_keys"], conv_row, static["Mc"], Kc)
    lin_in = stack(static["lin_keys"], lin_row, static["Ml"], Kl)
    bias_in = stack(static["bias_keys"], bias_row, static["Mb"], Kb)
    return conv_in, lin_in, bias_in


def _vmem_cap_bytes():
    try:
        return int(pltpu.get_tpu_info().vmem_capacity_bytes)
    except Exception:
        return 64 << 20   # conservative: v7x physical VMEM per TensorCore


def _compute_vmem_limit(blocks, scratch):
    total = 0
    for shape, dt in blocks:
        total += 2 * math.prod(shape) * np.dtype(dt).itemsize   # double-buffered
    for shape, dt in scratch:
        total += math.prod(shape) * np.dtype(dt).itemsize
    limit = int(total * 1.5) + (8 << 20)       # headroom for compiler scratch
    cap = int(0.75 * _vmem_cap_bytes())
    return max(32 << 20, min(limit, cap))


def _run_fused(packed, dims, static, conv_in, lin_in, bias_in, use_layernorm):
    Kc, TKc, Kl, Kb, Fp, hid = (dims["Kc"], dims["TKc"], dims["Kl"],
                                dims["Kb"], dims["Fp"], dims["hid"])
    Mc, Ml, Mb, Np = static["Mc"], static["Ml"], static["Mb"], static["Np"]
    nKc = Kc // TKc
    Mtot = Mc + Ml + Mb
    const00 = lambda p, k: (0, 0)

    in_arrays = [
        conv_in, packed["conv_enc_w"], packed["conv_dec_w"], packed["conv_dec_b"],
        lin_in, bias_in, packed["lb_enc_w"], packed["lb_dec_w"], packed["lb_dec_b"],
        static["s_all"], static["base"], static["a_norm"],
        packed["gcn_w"], packed["smalls"],
    ]
    in_specs = [
        # conv encoder operands stream Kc tiles in phase 0; in phase 1 the
        # index is pinned to the last tile so nothing is re-fetched.
        pl.BlockSpec((Mc, TKc), lambda p, k: (0, k * (1 - p) + (nKc - 1) * p)),
        pl.BlockSpec((TKc, Fp), lambda p, k: (k * (1 - p) + (nKc - 1) * p, 0)),
        # conv decoder operands stream Kc tiles in phase 1; pinned to tile 0
        # during phase 0 (single prefetch, no re-fetch).
        pl.BlockSpec((Fp, TKc), lambda p, k: (0, p * k)),
        pl.BlockSpec((1, TKc), lambda p, k: (0, p * k)),
        # everything else is one full, constant block -> exactly one DMA each.
        pl.BlockSpec((Ml, Kl), const00),
        pl.BlockSpec((Mb, Kb), const00),
        pl.BlockSpec((Kl + Kb, Fp), const00),
        pl.BlockSpec((Fp, Kl + Kb), const00),
        pl.BlockSpec((1, Kl + Kb), const00),
        pl.BlockSpec((Np, Mtot), const00),
        pl.BlockSpec((Np, Fp), const00),
        pl.BlockSpec((Np, Np), const00),
        pl.BlockSpec((2 * Fp, Fp), const00),
        pl.BlockSpec((8, Fp), const00),
    ]
    out_shapes = (
        jax.ShapeDtypeStruct((Mc, Kc), jnp.float32),
        jax.ShapeDtypeStruct((Ml, Kl), jnp.float32),
        jax.ShapeDtypeStruct((Mb, Kb), jnp.float32),
    )
    out_specs = (
        pl.BlockSpec((Mc, TKc), lambda p, k: (0, p * k)),   # lane-dense tiles
        pl.BlockSpec((Ml, Kl), const00),
        pl.BlockSpec((Mb, Kb), const00),
    )
    scratch = [((Mc, Fp), jnp.float32), ((Mc, Fp), jnp.bfloat16)]
    scratch_shapes = [pltpu.VMEM(s, d) for s, d in scratch]

    vmem_limit = _compute_vmem_limit(
        [(s.block_shape, a.dtype) for s, a in zip(in_specs, in_arrays)]
        + [(s.block_shape, o.dtype) for s, o in zip(out_specs, out_shapes)],
        scratch)

    kernel = functools.partial(
        _ghn_fused_kernel, hid=hid, Kl=Kl, Fp=Fp, Mc=Mc, Ml=Ml,
        use_layernorm=use_layernorm)

    return pl.pallas_call(
        kernel,
        out_shape=out_shapes,
        grid_spec=pltpu.PrefetchScalarGridSpec(
            num_scalar_prefetch=0,
            grid=(2, nKc),
            in_specs=in_specs,
            out_specs=out_specs,
            scratch_shapes=scratch_shapes),
        compiler_params=pltpu.CompilerParams(
            # Phase axis and the phase-0 Kc reduction are both sequential.
            # TODO(synk): for v7x megacore, split the phase-1 decoder into its
            #             own pallas_call with a "parallel" Kc axis.
            dimension_semantics=("arbitrary", "arbitrary"),
            vmem_limit_bytes=vmem_limit),
    )(*in_arrays)


def ghn_forward(params, graph, data, max_shape, hid,
                use_layernorm=True, weight_norm=False):
    # `packed` is parameter-static and `static` is graph-static: in a training
    # / eval loop cache both and only rebuild the (data-dependent) weight rows.
    packed, dims = pack_ghn_params(params, max_shape, hid)
    static = build_graph_static(graph, data, packed, dims)
    conv_in, lin_in, bias_in = build_weight_rows(data, static, dims)

    dec_conv, dec_lin, dec_bias = _run_fused(
        packed, dims, static, conv_in, lin_in, bias_in, use_layernorm)

    conv_flat, lin_flat, bias_flat = (dims["conv_flat"], dims["lin_flat"],
                                      dims["bias_flat"])
    out = {}
    for i, pkey in enumerate(static["conv_keys"]):
        s = data[pkey].shape
        p = dec_conv[i, :conv_flat].reshape(max_shape)[:s[0], :s[1], :s[2], :s[3]]
        out[pkey] = _normalize(p, True) if weight_norm else p
    for i, pkey in enumerate(static["lin_keys"]):
        s = data[pkey].shape
        p = dec_lin[i, :lin_flat].reshape(max_shape[:2])[:s[0], :s[1]]
        out[pkey] = _normalize(p, True) if weight_norm else p
    for i, pkey in enumerate(static["bias_keys"]):
        s = data[pkey].shape
        p = dec_bias[i, :bias_flat][:s[0]]
        out[pkey] = _normalize(p, False) if weight_norm else p
    return out


# -----------------------------------------------------------------------------
# Example run
# -----------------------------------------------------------------------------

if __name__ == "__main__":
    max_shape = (8, 8, 3, 3)   # (out_ch, in_ch, kh, kw) upper bound, NCHW order
    hid = 32

    params = init_ghn_params(jax.random.PRNGKey(0), max_shape, hid)

    # Synthetic "data" dict of parameter tensors the GHN will predict.
    dkeys = jax.random.split(jax.random.PRNGKey(0), 5)
    data = {
        "conv1.weight": jax.random.normal(dkeys[0], (4, 3, 3, 3), jnp.float32),
        "conv1.bias":   jax.random.normal(dkeys[1], (4,), jnp.float32),
        "conv2.weight": jax.random.normal(dkeys[2], (8, 4, 3, 3), jnp.float32),
        "fc.weight":    jax.random.normal(dkeys[3], (5, 8), jnp.float32),
        "fc.bias":      jax.random.normal(dkeys[4], (5,), jnp.float32),
    }

    # Synthetic computational graph: node 0 is the input node (no parameter).
    node_params = [
        ("input", None),
        ("conv", "conv1.weight"),
        ("bias", "conv1.bias"),
        ("conv", "conv2.weight"),
        ("linear", "fc.weight"),
        ("bias", "fc.bias"),
    ]
    n_nodes = len(node_params)
    adj = jnp.zeros((n_nodes, n_nodes), jnp.int32)
    for i in range(n_nodes - 1):  # simple chain, symmetrized
        adj = adj.at[i, i + 1].set(1)
        adj = adj.at[i + 1, i].set(1)

    graph = {"n_nodes": n_nodes, "node_params": node_params, "adj": adj}

    out = ghn_forward(params, graph, data, max_shape, hid,
                      use_layernorm=True, weight_norm=False)

    for k in sorted(out.keys()):
        jax.block_until_ready(out[k])
        assert out[k].shape == data[k].shape, (k, out[k].shape, data[k].shape)
        assert bool(jnp.all(jnp.isfinite(out[k]))), k

    print("KERNEL_OK")
</pallas_src>

<mosaic_0001>
module attributes {stable_mosaic.version = 11 : i64} {
  func.func @_ghn_fused_kernel(%arg0: i32, %arg1: i32, %arg2: memref<16x640xbf16, #tpu.memory_space<vmem>>, %arg3: memref<640x128xbf16, #tpu.memory_space<vmem>>, %arg4: memref<128x640xbf16, #tpu.memory_space<vmem>>, %arg5: memref<1x640xf32, #tpu.memory_space<vmem>>, %arg6: memref<16x128xbf16, #tpu.memory_space<vmem>>, %arg7: memref<16x128xbf16, #tpu.memory_space<vmem>>, %arg8: memref<256x128xbf16, #tpu.memory_space<vmem>>, %arg9: memref<128x256xbf16, #tpu.memory_space<vmem>>, %arg10: memref<1x256xf32, #tpu.memory_space<vmem>>, %arg11: memref<8x48xf32, #tpu.memory_space<vmem>>, %arg12: memref<8x128xf32, #tpu.memory_space<vmem>>, %arg13: memref<8x8xf32, #tpu.memory_space<vmem>>, %arg14: memref<256x128xf32, #tpu.memory_space<vmem>>, %arg15: memref<8x128xf32, #tpu.memory_space<vmem>>, %arg16: memref<16x640xf32, #tpu.memory_space<vmem>>, %arg17: memref<16x128xf32, #tpu.memory_space<vmem>>, %arg18: memref<16x128xf32, #tpu.memory_space<vmem>>, %arg19: memref<16x128xf32, #tpu.memory_space<vmem>>, %arg20: memref<16x128xbf16, #tpu.memory_space<vmem>>) attributes {dimension_semantics = [#tpu.dimension_semantics<arbitrary>, #tpu.dimension_semantics<arbitrary>], iteration_bounds = array<i64: 2, 1>, scalar_prefetch = 0 : i64, scratch_operands = 2 : i64, tpu.core_type = #tpu.core_type<tc>, window_params = [{transform_indices = @transform_0, window_bounds = array<i64: 16, 640>}, {transform_indices = @transform_1, window_bounds = array<i64: 640, 128>}, {transform_indices = @transform_2, window_bounds = array<i64: 128, 640>}, {transform_indices = @transform_3, window_bounds = array<i64: 1, 640>}, {pipeline_mode = #tpu.pipeline_mode<synchronous>, transform_indices = @transform_4, window_bounds = array<i64: 16, 128>}, {pipeline_mode = #tpu.pipeline_mode<synchronous>, transform_indices = @transform_5, window_bounds = array<i64: 16, 128>}, {pipeline_mode = #tpu.pipeline_mode<synchronous>, transform_indices = @transform_6, window_bounds = array<i64: 256, 128>}, {pipeline_mode = #tpu.pipeline_mode<synchronous>, transform_indices = @transform_7, window_bounds = array<i64: 128, 256>}, {pipeline_mode = #tpu.pipeline_mode<synchronous>, transform_indices = @transform_8, window_bounds = array<i64: 1, 256>}, {pipeline_mode = #tpu.pipeline_mode<synchronous>, transform_indices = @transform_9, window_bounds = array<i64: 8, 48>}, {pipeline_mode = #tpu.pipeline_mode<synchronous>, transform_indices = @transform_10, window_bounds = array<i64: 8, 128>}, {pipeline_mode = #tpu.pipeline_mode<synchronous>, transform_indices = @transform_11, window_bounds = array<i64: 8, 8>}, {pipeline_mode = #tpu.pipeline_mode<synchronous>, transform_indices = @transform_12, window_bounds = array<i64: 256, 128>}, {pipeline_mode = #tpu.pipeline_mode<synchronous>, transform_indices = @transform_13, window_bounds = array<i64: 8, 128>}, {transform_indices = @transform_14, window_bounds = array<i64: 16, 640>}, {pipeline_mode = #tpu.pipeline_mode<synchronous>, transform_indices = @transform_15, window_bounds = array<i64: 16, 128>}, {pipeline_mode = #tpu.pipeline_mode<synchronous>, transform_indices = @transform_16, window_bounds = array<i64: 16, 128>}]} {
    %c0_i32 = arith.constant 0 : i32
    %0 = arith.cmpi eq, %arg0, %c0_i32 : i32
    %c0_i32_0 = arith.constant 0 : i32
    %1 = arith.cmpi eq, %arg1, %c0_i32_0 : i32
    %2 = arith.andi %0, %1 : i1
    %3 = arith.extui %2 : i1 to i32
    %c0_i32_1 = arith.constant 0 : i32
    %4 = arith.cmpi ne, %3, %c0_i32_1 : i32
    scf.if %4 {
      %cst = arith.constant 0.000000e+00 : f32
      %16 = vector.broadcast %cst : f32 to vector<16x128xf32>
      %c0 = arith.constant 0 : index
      %c0_8 = arith.constant 0 : index
      %17 = vector.load %arg19[%c0, %c0_8] : memref<16x128xf32, #tpu.memory_space<vmem>>, vector<16x128xf32>
      tpu.vector_store %arg19[%c0, %c0_8], %16 {strides = array<i32>} : memref<16x128xf32, #tpu.memory_space<vmem>>, vector<16x128xf32>,
    } else {
    }
    %c0_i32_2 = arith.constant 0 : i32
    %5 = arith.cmpi eq, %arg0, %c0_i32_2 : i32
    %6 = arith.extui %5 : i1 to i32
    %c0_i32_3 = arith.constant 0 : i32
    %7 = arith.cmpi ne, %6, %c0_i32_3 : i32
    scf.if %7 {
      %c0 = arith.constant 0 : index
      %c0_8 = arith.constant 0 : index
      %16 = vector.load %arg19[%c0, %c0_8] : memref<16x128xf32, #tpu.memory_space<vmem>>, vector<16x128xf32>
      %c0_9 = arith.constant 0 : index
      %c0_10 = arith.constant 0 : index
      %17 = vector.load %arg2[%c0_9, %c0_10] : memref<16x640xbf16, #tpu.memory_space<vmem>>, vector<16x640xbf16>
      %c0_11 = arith.constant 0 : index
      %c0_12 = arith.constant 0 : index
      %18 = vector.load %arg3[%c0_11, %c0_12] : memref<640x128xbf16, #tpu.memory_space<vmem>>, vector<640x128xbf16>
      %cst = arith.constant dense<0.000000e+00> : vector<16x128xf32>
      %19 = tpu.matmul %17, %18, %cst {dimension_numbers = #tpu.dot_dimension_numbers<[1], [0], [0], [1], [0, 0, 1, 1], [], []>} : vector<16x640xbf16>, vector<640x128xbf16>, vector<16x128xf32> -> vector<16x128xf32>
      %20 = arith.addf %16, %19 : vector<16x128xf32>
      %c0_13 = arith.constant 0 : index
      %c0_14 = arith.constant 0 : index
      %21 = vector.load %arg19[%c0_13, %c0_14] : memref<16x128xf32, #tpu.memory_space<vmem>>, vector<16x128xf32>
      tpu.vector_store %arg19[%c0_13, %c0_14], %20 {strides = array<i32>} : memref<16x128xf32, #tpu.memory_space<vmem>>, vector<16x128xf32>,
    } else {
    }
    %c0_i32_4 = arith.constant 0 : i32
    %8 = arith.cmpi eq, %arg0, %c0_i32_4 : i32
    %c0_i32_5 = arith.constant 0 : i32
    %9 = arith.cmpi eq, %arg1, %c0_i32_5 : i32
    %10 = arith.andi %8, %9 : i1
    %11 = arith.extui %10 : i1 to i32
    %c0_i32_6 = arith.constant 0 : i32
    %12 = arith.cmpi ne, %11, %c0_i32_6 : i32
    scf.if %12 {
      %c0 = arith.constant 0 : index
      %c0_8 = arith.constant 0 : index
      %16 = vector.load %arg15[%c0, %c0_8] : memref<8x128xf32, #tpu.memory_space<vmem>>, vector<8x128xf32>
      %c0_9 = arith.constant 0 : index
      %c0_10 = arith.constant 0 : index
      %17 = vector.load %arg19[%c0_9, %c0_10] : memref<16x128xf32, #tpu.memory_space<vmem>>, vector<16x128xf32>
      %18 = vector.extract_strided_slice %16 {offsets = [0, 0], sizes = [1, 128], strides = [1, 1]} : vector<8x128xf32> to vector<1x128xf32>
      %19 = vector.broadcast %18 : vector<1x128xf32> to vector<16x128xf32>
      %20 = arith.addf %17, %19 : vector<16x128xf32>
      %c0_11 = arith.constant 0 : index
      %c0_12 = arith.constant 0 : index
      %21 = vector.load %arg6[%c0_11, %c0_12] : memref<16x128xbf16, #tpu.memory_space<vmem>>, vector<16x128xbf16>
      %c0_13 = arith.constant 0 : index
      %c0_14 = arith.constant 0 : index
      %22 = vector.load %arg8[%c0_13, %c0_14] : memref<256x128xbf16, #tpu.memory_space<vmem>>, vector<128x128xbf16>
      %cst = arith.constant dense<0.000000e+00> : vector<16x128xf32>
      %23 = tpu.matmul %21, %22, %cst {dimension_numbers = #tpu.dot_dimension_numbers<[1], [0], [0], [1], [0, 0, 1, 1], [], []>} : vector<16x128xbf16>, vector<128x128xbf16>, vector<16x128xf32> -> vector<16x128xf32>
      %24 = vector.extract_strided_slice %16 {offsets = [1, 0], sizes = [1, 128], strides = [1, 1]} : vector<8x128xf32> to vector<1x128xf32>
      %25 = vector.broadcast %24 : vector<1x128xf32> to vector<16x128xf32>
      %26 = arith.addf %23, %25 : vector<16x128xf32>
      %c0_15 = arith.constant 0 : index
      %c0_16 = arith.constant 0 : index
      %27 = vector.load %arg7[%c0_15, %c0_16] : memref<16x128xbf16, #tpu.memory_space<vmem>>, vector<16x128xbf16>
      %c128 = arith.constant 128 : index
      %c0_17 = arith.constant 0 : index
      %28 = vector.load %arg8[%c128, %c0_17] : memref<256x128xbf16, #tpu.memory_space<vmem>>, vector<128x128xbf16>
      %cst_18 = arith.constant dense<0.000000e+00> : vector<16x128xf32>
      %29 = tpu.matmul %27, %28, %cst_18 {dimension_numbers = #tpu.dot_dimension_numbers<[1], [0], [0], [1], [0, 0, 1, 1], [], []>} : vector<16x128xbf16>, vector<128x128xbf16>, vector<16x128xf32> -> vector<16x128xf32>
      %30 = vector.extract_strided_slice %16 {offsets = [2, 0], sizes = [1, 128], strides = [1, 1]} : vector<8x128xf32> to vector<1x128xf32>
      %31 = vector.broadcast %30 : vector<1x128xf32> to vector<16x128xf32>
      %32 = arith.addf %29, %31 : vector<16x128xf32>
      %33 = tpu.concatenate %20, %26, %32 in 0 : vector<16x128xf32>, vector<16x128xf32>, vector<16x128xf32> -> vector<48x128xf32>
      %c0_19 = arith.constant 0 : index
      %c0_20 = arith.constant 0 : index
      %34 = vector.load %arg11[%c0_19, %c0_20] : memref<8x48xf32, #tpu.memory_space<vmem>>, vector<8x48xf32>
      %c0_21 = arith.constant 0 : index
      %c0_22 = arith.constant 0 : index
      %35 = vector.load %arg12[%c0_21, %c0_22] : memref<8x128xf32, #tpu.memory_space<vmem>>, vector<8x128xf32>
      %cst_23 = arith.constant dense<0.000000e+00> : vector<8x128xf32>
      %36 = tpu.matmul %34, %33, %cst_23 {dimension_numbers = #tpu.dot_dimension_numbers<[1], [0], [0], [1], [0, 0, 1, 1], [], []>} : vector<8x48xf32>, vector<48x128xf32>, vector<8x128xf32> -> vector<8x128xf32>
      %37 = arith.addf %35, %36 : vector<8x128xf32>
      %c0_24 = arith.constant 0 : index
      %c0_25 = arith.constant 0 : index
      %38 = vector.load %arg13[%c0_24, %c0_25] : memref<8x8xf32, #tpu.memory_space<vmem>>, vector<8x8xf32>
      %c0_26 = arith.constant 0 : index
      %c0_27 = arith.constant 0 : index
      %39 = vector.load %arg14[%c0_26, %c0_27] : memref<256x128xf32, #tpu.memory_space<vmem>>, vector<256x128xf32>
      %cst_28 = arith.constant dense<0.000000e+00> : vector<8x128xf32>
      %40 = tpu.matmul %38, %37, %cst_28 {dimension_numbers = #tpu.dot_dimension_numbers<[1], [0], [0], [1], [0, 0, 1, 1], [], []>} : vector<8x8xf32>, vector<8x128xf32>, vector<8x128xf32> -> vector<8x128xf32>
      %41 = vector.extract_strided_slice %39 {offsets = [0, 0], sizes = [128, 128], strides = [1, 1]} : vector<256x128xf32> to vector<128x128xf32>
      %cst_29 = arith.constant dense<0.000000e+00> : vector<8x128xf32>
      %42 = tpu.matmul %40, %41, %cst_29 {dimension_numbers = #tpu.dot_dimension_numbers<[1], [0], [0], [1], [0, 0, 1, 1], [], []>} : vector<8x128xf32>, vector<128x128xf32>, vector<8x128xf32> -> vector<8x128xf32>
      %43 = vector.extract_strided_slice %16 {offsets = [3, 0], sizes = [1, 128], strides = [1, 1]} : vector<8x128xf32> to vector<1x128xf32>
      %44 = vector.broadcast %43 : vector<1x128xf32> to vector<8x128xf32>
      %45 = arith.addf %42, %44 : vector<8x128xf32>
      %cst_30 = arith.constant 0.000000e+00 : f32
      %46 = vector.broadcast %cst_30 : f32 to vector<8x128xf32>
      %47 = arith.maximumf %45, %46 : vector<8x128xf32>
      %cst_31 = arith.constant dense<0.000000e+00> : vector<8x128xf32>
      %48 = tpu.matmul %38, %47, %cst_31 {dimension_numbers = #tpu.dot_dimension_numbers<[1], [0], [0], [1], [0, 0, 1, 1], [], []>} : vector<8x8xf32>, vector<8x128xf32>, vector<8x128xf32> -> vector<8x128xf32>
      %49 = vector.extract_strided_slice %39 {offsets = [128, 0], sizes = [128, 128], strides = [1, 1]} : vector<256x128xf32> to vector<128x128xf32>
      %cst_32 = arith.constant dense<0.000000e+00> : vector<8x128xf32>
      %50 = tpu.matmul %48, %49, %cst_32 {dimension_numbers = #tpu.dot_dimension_numbers<[1], [0], [0], [1], [0, 0, 1, 1], [], []>} : vector<8x128xf32>, vector<128x128xf32>, vector<8x128xf32> -> vector<8x128xf32>
      %51 = vector.extract_strided_slice %16 {offsets = [4, 0], sizes = [1, 128], strides = [1, 1]} : vector<8x128xf32> to vector<1x128xf32>
      %52 = vector.broadcast %51 : vector<1x128xf32> to vector<8x128xf32>
      %53 = arith.addf %50, %52 : vector<8x128xf32>
      %cst_33 = arith.constant dense<0.000000e+00> : vector<8xf32>
      %54 = vector.multi_reduction <add>, %53, %cst_33 [1] : vector<8x128xf32> to vector<8xf32>
      %55 = vector.shape_cast %54 : vector<8xf32> to vector<8x1xf32>
      %cst_34 = arith.constant 1.562500e-02 : f32
      %56 = vector.broadcast %cst_34 : f32 to vector<8x1xf32>
      %57 = arith.mulf %55, %56 : vector<8x1xf32>
      %58 = arith.mulf %53, %53 : vector<8x128xf32>
      %cst_35 = arith.constant dense<0.000000e+00> : vector<8xf32>
      %59 = vector.multi_reduction <add>, %58, %cst_35 [1] : vector<8x128xf32> to vector<8xf32>
      %60 = vector.shape_cast %59 : vector<8xf32> to vector<8x1xf32>
      %cst_36 = arith.constant 1.562500e-02 : f32
      %61 = vector.broadcast %cst_36 : f32 to vector<8x1xf32>
      %62 = arith.mulf %60, %61 : vector<8x1xf32>
      %63 = arith.mulf %57, %57 : vector<8x1xf32>
      %64 = arith.subf %62, %63 : vector<8x1xf32>
      %65 = vector.broadcast %57 : vector<8x1xf32> to vector<8x128xf32>
      %66 = arith.subf %53, %65 : vector<8x128xf32>
      %cst_37 = arith.constant 9.99999974E-6 : f32
      %67 = vector.broadcast %cst_37 : f32 to vector<8x1xf32>
      %68 = arith.addf %64, %67 : vector<8x1xf32>
      %69 = math.rsqrt %68 : vector<8x1xf32>
      %70 = vector.broadcast %69 : vector<8x1xf32> to vector<8x128xf32>
      %71 = arith.mulf %66, %70 : vector<8x128xf32>
      %72 = vector.extract_strided_slice %16 {offsets = [5, 0], sizes = [1, 128], strides = [1, 1]} : vector<8x128xf32> to vector<1x128xf32>
      %73 = vector.broadcast %72 : vector<1x128xf32> to vector<8x128xf32>
      %74 = arith.mulf %71, %73 : vector<8x128xf32>
      %75 = vector.extract_strided_slice %16 {offsets = [6, 0], sizes = [1, 128], strides = [1, 1]} : vector<8x128xf32> to vector<1x128xf32>
      %76 = vector.broadcast %75 : vector<1x128xf32> to vector<8x128xf32>
      %77 = arith.addf %74, %76 : vector<8x128xf32>
      %cst_38 = arith.constant dense<0.000000e+00> : vector<48x128xf32>
      %78 = tpu.matmul %34, %77, %cst_38 {dimension_numbers = #tpu.dot_dimension_numbers<[0], [0], [1], [1], [0, 1, 1, 1], [], []>} : vector<8x48xf32>, vector<8x128xf32>, vector<48x128xf32> -> vector<48x128xf32>
      %79 = vector.extract_strided_slice %78 {offsets = [0, 0], sizes = [16, 128], strides = [1, 1]} : vector<48x128xf32> to vector<16x128xf32>
      %80 = arith.truncf %79 : vector<16x128xf32> to vector<16x128xbf16>
      %c0_39 = arith.constant 0 : index
      %c0_40 = arith.constant 0 : index
      %81 = vector.load %arg20[%c0_39, %c0_40] : memref<16x128xbf16, #tpu.memory_space<vmem>>, vector<16x128xbf16>
      tpu.vector_store %arg20[%c0_39, %c0_40], %80 {strides = array<i32>} : memref<16x128xbf16, #tpu.memory_space<vmem>>, vector<16x128xbf16>,
      %82 = vector.extract_strided_slice %78 {offsets = [16, 0], sizes = [16, 128], strides = [1, 1]} : vector<48x128xf32> to vector<16x128xf32>
      %83 = arith.truncf %82 : vector<16x128xf32> to vector<16x128xbf16>
      %84 = vector.extract_strided_slice %78 {offsets = [32, 0], sizes = [16, 128], strides = [1, 1]} : vector<48x128xf32> to vector<16x128xf32>
      %85 = arith.truncf %84 : vector<16x128xf32> to vector<16x128xbf16>
      %c0_41 = arith.constant 0 : index
      %c0_42 = arith.constant 0 : index
      %86 = vector.load %arg9[%c0_41, %c0_42] : memref<128x256xbf16, #tpu.memory_space<vmem>>, vector<128x128xbf16>
      %cst_43 = arith.constant dense<0.000000e+00> : vector<16x128xf32>
      %87 = tpu.matmul %83, %86, %cst_43 {dimension_numbers = #tpu.dot_dimension_numbers<[1], [0], [0], [1], [0, 0, 1, 1], [], []>} : vector<16x128xbf16>, vector<128x128xbf16>, vector<16x128xf32> -> vector<16x128xf32>
      %c0_44 = arith.constant 0 : index
      %c0_45 = arith.constant 0 : index
      %88 = vector.load %arg10[%c0_44, %c0_45] : memref<1x256xf32, #tpu.memory_space<vmem>>, vector<1x128xf32>
      %89 = vector.broadcast %88 : vector<1x128xf32> to vector<16x128xf32>
      %90 = arith.addf %87, %89 : vector<16x128xf32>
      %c0_46 = arith.constant 0 : index
      %c0_47 = arith.constant 0 : index
      %91 = vector.load %arg17[%c0_46, %c0_47] : memref<16x128xf32, #tpu.memory_space<vmem>>, vector<16x128xf32>
      tpu.vector_store %arg17[%c0_46, %c0_47], %90 {strides = array<i32>} : memref<16x128xf32, #tpu.memory_space<vmem>>, vector<16x128xf32>,
      %c0_48 = arith.constant 0 : index
      %c128_49 = arith.constant 128 : index
      %92 = vector.load %arg9[%c0_48, %c128_49] : memref<128x256xbf16, #tpu.memory_space<vmem>>, vector<128x128xbf16>
      %cst_50 = arith.constant dense<0.000000e+00> : vector<16x128xf32>
      %93 = tpu.matmul %85, %92, %cst_50 {dimension_numbers = #tpu.dot_dimension_numbers<[1], [0], [0], [1], [0, 0, 1, 1], [], []>} : vector<16x128xbf16>, vector<128x128xbf16>, vector<16x128xf32> -> vector<16x128xf32>
      %c0_51 = arith.constant 0 : index
      %c128_52 = arith.constant 128 : index
      %94 = vector.load %arg10[%c0_51, %c128_52] : memref<1x256xf32, #tpu.memory_space<vmem>>, vector<1x128xf32>
      %95 = vector.broadcast %94 : vector<1x128xf32> to vector<16x128xf32>
      %96 = arith.addf %93, %95 : vector<16x128xf32>
      %c0_53 = arith.constant 0 : index
      %c0_54 = arith.constant 0 : index
      %97 = vector.load %arg18[%c0_53, %c0_54] : memref<16x128xf32, #tpu.memory_space<vmem>>, vector<16x128xf32>
      tpu.vector_store %arg18[%c0_53, %c0_54], %96 {strides = array<i32>} : memref<16x128xf32, #tpu.memory_space<vmem>>, vector<16x128xf32>,
    } else {
    }
    %c1_i32 = arith.constant 1 : i32
    %13 = arith.cmpi eq, %arg0, %c1_i32 : i32
    %14 = arith.extui %13 : i1 to i32
    %c0_i32_7 = arith.constant 0 : i32
    %15 = arith.cmpi ne, %14, %c0_i32_7 : i32
    scf.if %15 {
      %c0 = arith.constant 0 : index
      %c0_8 = arith.constant 0 : index
      %16 = vector.load %arg20[%c0, %c0_8] : memref<16x128xbf16, #tpu.memory_space<vmem>>, vector<16x128xbf16>
      %c0_9 = arith.constant 0 : index
      %c0_10 = arith.constant 0 : index
      %17 = vector.load %arg4[%c0_9, %c0_10] : memref<128x640xbf16, #tpu.memory_space<vmem>>, vector<128x640xbf16>
      %cst = arith.constant dense<0.000000e+00> : vector<16x640xf32>
      %18 = tpu.matmul %16, %17, %cst {dimension_numbers = #tpu.dot_dimension_numbers<[1], [0], [0], [1], [0, 0, 1, 1], [], []>} : vector<16x128xbf16>, vector<128x640xbf16>, vector<16x640xf32> -> vector<16x640xf32>
      %c0_11 = arith.constant 0 : index
      %c0_12 = arith.constant 0 : index
      %19 = vector.load %arg5[%c0_11, %c0_12] : memref<1x640xf32, #tpu.memory_space<vmem>>, vector<1x640xf32>
      %20 = vector.broadcast %19 : vector<1x640xf32> to vector<16x640xf32>
      %21 = arith.addf %18, %20 : vector<16x640xf32>
      %c0_13 = arith.constant 0 : index
      %c0_14 = arith.constant 0 : index
      %22 = vector.load %arg16[%c0_13, %c0_14] : memref<16x640xf32, #tpu.memory_space<vmem>>, vector<16x640xf32>
      tpu.vector_store %arg16[%c0_13, %c0_14], %21 {strides = array<i32>} : memref<16x640xf32, #tpu.memory_space<vmem>>, vector<16x640xf32>,
    } else {
    }
    return
  }
  func.func @transform_0(%arg0: i32, %arg1: i32) -> (i32, i32) {
    %c1_i32 = arith.constant 1 : i32
    %0 = arith.subi %c1_i32, %arg0 : i32
    %1 = arith.muli %arg1, %0 : i32
    %c0_i32 = arith.constant 0 : i32
    %2 = arith.muli %c0_i32, %arg0 : i32
    %3 = arith.addi %1, %2 : i32
    %c0_i32_0 = arith.constant 0 : i32
    %c0_i32_1 = arith.constant 0 : i32
    return %c0_i32_0, %3 : i32, i32
  }
  func.func @transform_1(%arg0: i32, %arg1: i32) -> (i32, i32) {
    %c1_i32 = arith.constant 1 : i32
    %0 = arith.subi %c1_i32, %arg0 : i32
    %1 = arith.muli %arg1, %0 : i32
    %c0_i32 = arith.constant 0 : i32
    %2 = arith.muli %c0_i32, %arg0 : i32
    %3 = arith.addi %1, %2 : i32
    %c0_i32_0 = arith.constant 0 : i32
    %c0_i32_1 = arith.constant 0 : i32
    return %3, %c0_i32_0 : i32, i32
  }
  func.func @transform_2(%arg0: i32, %arg1: i32) -> (i32, i32) {
    %0 = arith.muli %arg0, %arg1 : i32
    %c0_i32 = arith.constant 0 : i32
    %c0_i32_0 = arith.constant 0 : i32
    return %c0_i32, %0 : i32, i32
  }
  func.func @transform_3(%arg0: i32, %arg1: i32) -> (i32, i32) {
    %0 = arith.muli %arg0, %arg1 : i32
    %c0_i32 = arith.constant 0 : i32
    %c0_i32_0 = arith.constant 0 : i32
    return %c0_i32, %0 : i32, i32
  }
  func.func @transform_4(%arg0: i32, %arg1: i32) -> (i32, i32) {
    %c0_i32 = arith.constant 0 : i32
    %c0_i32_0 = arith.constant 0 : i32
    %c0_i32_1 = arith.constant 0 : i32
    return %c0_i32, %c0_i32_0 : i32, i32
  }
  func.func @transform_5(%arg0: i32, %arg1: i32) -> (i32, i32) {
    %c0_i32 = arith.constant 0 : i32
    %c0_i32_0 = arith.constant 0 : i32
    %c0_i32_1 = arith.constant 0 : i32
    return %c0_i32, %c0_i32_0 : i32, i32
  }
  func.func @transform_6(%arg0: i32, %arg1: i32) -> (i32, i32) {
    %c0_i32 = arith.constant 0 : i32
    %c0_i32_0 = arith.constant 0 : i32
    %c0_i32_1 = arith.constant 0 : i32
    return %c0_i32, %c0_i32_0 : i32, i32
  }
  func.func @transform_7(%arg0: i32, %arg1: i32) -> (i32, i32) {
    %c0_i32 = arith.constant 0 : i32
    %c0_i32_0 = arith.constant 0 : i32
    %c0_i32_1 = arith.constant 0 : i32
    return %c0_i32, %c0_i32_0 : i32, i32
  }
  func.func @transform_8(%arg0: i32, %arg1: i32) -> (i32, i32) {
    %c0_i32 = arith.constant 0 : i32
    %c0_i32_0 = arith.constant 0 : i32
    %c0_i32_1 = arith.constant 0 : i32
    return %c0_i32, %c0_i32_0 : i32, i32
  }
  func.func @transform_9(%arg0: i32, %arg1: i32) -> (i32, i32) {
    %c0_i32 = arith.constant 0 : i32
    %c0_i32_0 = arith.constant 0 : i32
    %c0_i32_1 = arith.constant 0 : i32
    return %c0_i32, %c0_i32_0 : i32, i32
  }
  func.func @transform_10(%arg0: i32, %arg1: i32) -> (i32, i32) {
    %c0_i32 = arith.constant 0 : i32
    %c0_i32_0 = arith.constant 0 : i32
    %c0_i32_1 = arith.constant 0 : i32
    return %c0_i32, %c0_i32_0 : i32, i32
  }
  func.func @transform_11(%arg0: i32, %arg1: i32) -> (i32, i32) {
    %c0_i32 = arith.constant 0 : i32
    %c0_i32_0 = arith.constant 0 : i32
    %c0_i32_1 = arith.constant 0 : i32
    return %c0_i32, %c0_i32_0 : i32, i32
  }
  func.func @transform_12(%arg0: i32, %arg1: i32) -> (i32, i32) {
    %c0_i32 = arith.constant 0 : i32
    %c0_i32_0 = arith.constant 0 : i32
    %c0_i32_1 = arith.constant 0 : i32
    return %c0_i32, %c0_i32_0 : i32, i32
  }
  func.func @transform_13(%arg0: i32, %arg1: i32) -> (i32, i32) {
    %c0_i32 = arith.constant 0 : i32
    %c0_i32_0 = arith.constant 0 : i32
    %c0_i32_1 = arith.constant 0 : i32
    return %c0_i32, %c0_i32_0 : i32, i32
  }
  func.func @transform_14(%arg0: i32, %arg1: i32) -> (i32, i32) {
    %0 = arith.muli %arg0, %arg1 : i32
    %c0_i32 = arith.constant 0 : i32
    %c0_i32_0 = arith.constant 0 : i32
    return %c0_i32, %0 : i32, i32
  }
  func.func @transform_15(%arg0: i32, %arg1: i32) -> (i32, i32) {
    %c0_i32 = arith.constant 0 : i32
    %c0_i32_0 = arith.constant 0 : i32
    %c0_i32_1 = arith.constant 0 : i32
    return %c0_i32, %c0_i32_0 : i32, i32
  }
  func.func @transform_16(%arg0: i32, %arg1: i32) -> (i32, i32) {
    %c0_i32 = arith.constant 0 : i32
    %c0_i32_0 = arith.constant 0 : i32
    %c0_i32_1 = arith.constant 0 : i32
    return %c0_i32, %c0_i32_0 : i32, i32
  }
}

</mosaic_0001>

<bundles_post_ra>
// kernel: tpu_custom_call.1
= control target key start
LH: loop header
LB: loop body
LE: loop exit
PB: predicated region body
PF: predicated region fallthrough
CT: control target
= control target key end

     0   :  { %s4287_s0 = inlined_call_operand.hbm [shape: bf16[16,640], index: 0, kind: input, shape index: {}]   ;;  %s4288_s1 = inlined_call_operand.hbm [shape: bf16[640,128], index: 1, kind: input, shape index: {}]   ;;  %s4289_s2 = inlined_call_operand.hbm [shape: bf16[128,640], index: 2, kind: input, shape index: {}]   ;;  %s4290_s3 = inlined_call_operand.hbm [shape: f32[1,640], index: 3, kind: input, shape index: {}]   ;;  %s4291_s4 = inlined_call_operand.hbm [shape: bf16[16,128], index: 4, kind: input, shape index: {}]   ;;  %s4292_s5 = inlined_call_operand.hbm [shape: bf16[16,128], index: 5, kind: input, shape index: {}]   ;;  %s4293_s6 = inlined_call_operand.hbm [shape: bf16[256,128], index: 6, kind: input, shape index: {}]   ;;  %s4294_s7 = inlined_call_operand.hbm [shape: bf16[128,256], index: 7, kind: input, shape index: {}]   ;;  %s4295_s8 = inlined_call_operand.hbm [shape: f32[1,256], index: 8, kind: input, shape index: {}]   ;;  %s4296_s9 = inlined_call_operand.vmem [shape: f32[8,48], index: 9, kind: input, shape index: {}]   ;;  %s4297_s10 = inlined_call_operand.hbm [shape: f32[8,128], index: 10, kind: input, shape index: {}]   ;;  %s4298_s11 = inlined_call_operand.hbm [shape: f32[8,8], index: 11, kind: input, shape index: {}]   ;;  %s4299_s12 = inlined_call_operand.hbm [shape: f32[256,128], index: 12, kind: input, shape index: {}]   ;;  %s4300_s13 = inlined_call_operand.hbm [shape: f32[8,128], index: 13, kind: input, shape index: {}]   ;;  %s4301_s14 = inlined_call_operand.hbm [shape: f32[16,640], index: 14, kind: output, shape index: {0}]   ;;  %s4302_s15 = inlined_call_operand.hbm [shape: f32[16,128], index: 15, kind: output, shape index: {1}]   ;;  %s4303_s16 = inlined_call_operand.hbm [shape: f32[16,128], index: 16, kind: output, shape index: {2}]  }
   0x1   :  { %4306 = sst [smem:[#allocation41_spill]] %s4287_s0 }
   0x2   :  { %4307 = sst [smem:[#allocation42_spill]] %s4288_s1 }
   0x3   :  { %4308 = sst [smem:[#allocation43_spill]] %s4291_s4 }
   0x4   :  { %4309 = sst [smem:[#allocation44_spill]] %s4292_s5 }
   0x5   :  { %4310 = sst [smem:[#allocation45_spill]] %s4294_s7 }
   0x6   :  { %4311 = sst [smem:[#allocation46_spill]] %s4301_s14 }
   0x7   :  { %4312 = sst [smem:[#allocation47_spill]] %s4302_s15 }
   0x8   :  { %4313 = sst [smem:[#allocation48_spill]] %s4303_s16 }
   0x9   :  { %22 = vsyncpa [#allocation5], 0 }
   0xa   :  { %24 = vsyncpa [#allocation5 + $0x1], 0 }
   0xb   :  { %25 = vsyncpa [#allocation8], 0 }
   0xc   :  { %27 = vsyncpa [#allocation8 + $0x1], 0 }
   0xd   :  { %28 = vsyncpa [#allocation11], 0 }
   0xe   :  { %30 = vsyncpa [#allocation11 + $0x1], 0 }
   0xf   :  { %31 = vsyncpa [#allocation14], 0 }
  0x10   :  { %32 = vsyncpa [#allocation17], 0 }
  0x11   :  { %33 = vsyncpa [#allocation20], 0 }
  0x12   :  { %34 = vsyncpa [#allocation23], 0 }
  0x13   :  { %35 = vsyncpa [#allocation6], 0 }
  0x14   :  { %37 = vsyncpa [#allocation6 + $0x1], 0 }
  0x15   :  { %38 = vsyncpa [#allocation27], 0  ;;  %s4062_s21 = smov 0   ;;  %s4064_s22 = smov 0  }
  0x16   :  { %s4066_s23 = smov 0  }
  0x17 LB: > { %4314 = sst [smem:[#allocation39_spill]] %s3944_s22  ;;  %s4078_s24 = sadd.s32 4294967295, %s3948_s23   ;;  %s3948_s23 = sphi %s4066_s23, %s44_s23   ;;  %s3944_s22 = sphi %s4064_s22, %s4330_s22   ;;  %s3940_s21 = sphi %s4062_s21, %s4329_s21  }
  0x18   : > { %s56_s26 = sadd.s32 1, %s3944_s22  ;;  %p2557_p0 = scmp.ge.s32.totalorder %s3948_s23, 1 }
  0x19   : > { %p58_p1 = scmp.ge.s32.totalorder %s56_s26, 2  ;;  %p457_p2 = scmp.lt.s32.totalorder %s3948_s23, 3 }
  0x1a   : > { %p3322_p3 = scmp.eq.s32.totalorder %s4078_s24, 0  ;;  %s4317_s4 = sld [smem:[#allocation43_spill]] }
  0x1b   : > { %s4332_s26 = smov (%p58_p1, %s56_s26), 0  ;;  %p4087_p4 = pnand %p2557_p0, %p457_p2 }
  0x1c   : > { %4315 = sst [smem:[#allocation40_spill]] %s4332_s26  ;;  %s3950_s0 = smov [#allocation12]  }
  0x1d   : > { %p3277_p5 = pneg %p4087_p4  ;;  %s470_s17 = sshll.u32 %s3950_s0, 4  ;;  %s471_s17 = int_to_ptr.vmem [resolvable:$true] %s470_s17 }
  0x1e   : > { %p2567_p7 = scmp.ge.s32.totalorder %s3948_s23, 2  ;;  %s4319_s5 = sld [smem:[#allocation44_spill]] }
  0x1f   : > { %p4098_p6 = pnand %p3322_p3, %p3277_p5  ;;  %s3951_s29 = smov 64  }
  0x20   : > { %s468_s30 = sshll.u32 %s4317_s4, 4  ;;  %s3952_s25 = smov 4   ;;  %s469_s30 = int_to_ptr.hbm [resolvable:$true] %s468_s30 }
  0x21   : > { %3280 = dma.hbm_to_vmem [thread:$0]  (!%p4098_p6), %s469_s30, 128, %s471_s17, [#allocation11], %s3951_s29, %s3951_s29, %s3952_s25  }
  0x22   : > { %s3953_s0 = smov [#allocation13]   ;;  %s4320_s7 = sld [smem:[#allocation45_spill]] }
  0x23   : > { %s484_s4 = sshll.u32 %s3953_s0, 4  ;;  %s3954_s19 = smov [#allocation16]   ;;  %s485_s4 = int_to_ptr.vmem [resolvable:$true] %s484_s4 }
  0x24   : > { %s482_s28 = sshll.u32 %s4319_s5, 4  ;;  %s512_s20 = sshll.u32 %s3954_s19, 4  ;;  %s483_s28 = int_to_ptr.hbm [resolvable:$true] %s482_s28  ;;  %s513_s20 = int_to_ptr.vmem [resolvable:$true] %s512_s20 }
  0x25   : > { %3283 = dma.hbm_to_vmem [thread:$0]  (!%p4098_p6), %s483_s28, 128, %s485_s4, [#allocation14], %s3951_s29, %s3951_s29, %s3952_s25  }
  0x26   : > { %s540_s0 = sshll.u32 %s4297_s10, 4  ;;  %s3955_s22 = smov 128   ;;  %s541_s0 = int_to_ptr.hbm [resolvable:$true] %s540_s0 }
  0x27   : > { %s3956_s26 = smov 8   ;;  %s3957_s5 = smov [#allocation19]  }
  0x28   : > { %s510_s16 = sshll.u32 %s4320_s7, 4  ;;  %s542_s7 = sshll.u32 %s3957_s5, 4  ;;  %s511_s16 = int_to_ptr.hbm [resolvable:$true] %s510_s16  ;;  %s543_s7 = int_to_ptr.vmem [resolvable:$true] %s542_s7 }
  0x29   : > { %3289 = dma.hbm_to_vmem [thread:$0]  (!%p4098_p6), %s511_s16, 2048, %s513_s20, [#allocation17], %s3955_s22, %s3955_s22, %s3956_s26  }
  0x2a   : > { %s563_s4 = sshll.u32 %s4299_s12, 4  ;;  %p3331_p8 = scmp.lt.s32.totalorder %s3948_s23, 2  ;;  %s564_s4 = int_to_ptr.hbm [resolvable:$true] %s563_s4 }
  0x2b   : > { %3295 = dma.hbm_to_vmem [thread:$0]  (!%p4098_p6), %s541_s0, 128, %s543_s7, [#allocation20]  }
  0x2c   : > { %s3958_s28 = smov [#allocation22]   ;;  %p3332_p9 = scmp.eq.s32.totalorder %s3948_s23, 0 }
  0x2d   : > { %s565_s19 = sshll.u32 %s3958_s28, 4  ;;  %s4305_s30 = sand.u32 1, %s3948_s23   ;;  %s566_s19 = int_to_ptr.vmem [resolvable:$true] %s565_s19 }
  0x2e   : > { %3301 = dma.hbm_to_vmem [thread:$0]  (!%p4098_p6), %s564_s4, 4096, %s566_s19, [#allocation23], %s3955_s22, %s3955_s22, %s3956_s26  }
  0x2f   : > { %p4134_p10 = pnand %p3332_p9, %p3331_p8  ;;  %s4322_s1 = sld [smem:[#allocation42_spill]] }
  0x30   : > { %s3959_s7 = smov [#allocation7]   ;;  %s496_s28 = sshll.u32 %s4293_s6, 4  ;;  %s497_s28 = int_to_ptr.hbm [resolvable:$true] %s496_s28 }
  0x31   : > { %s629_s20 = sshll.u32 %s3959_s7, 4  ;;  %s4146_s22 = scalar_lea.sflag [#allocation8], %s4305_s30  ;;  %s630_s20 = int_to_ptr.vmem [resolvable:$true] %s629_s20 }
  0x32   : > { %s525_s19 = sshll.u32 %s4295_s8, 4  ;;  %s3960_s14 = smov [#allocation15]   ;;  %s526_s19 = int_to_ptr.hbm [resolvable:$true] %s525_s19 }
  0x33   : > { %s498_s15 = sshll.u32 %s3960_s14, 4  ;;  %s3961_s7 = smov [#allocation18]   ;;  %s499_s15 = int_to_ptr.vmem [resolvable:$true] %s498_s15 }
  0x34   : > { %3286 = dma.hbm_to_vmem [thread:$0]  (!%p4098_p6), %s497_s28, 2048, %s499_s15, [#allocation14], %s3951_s29, %s3951_s29, %s3952_s25  }
  0x35   : > { %s627_s16 = sshll.u32 %s4322_s1, 4  ;;  %s527_s17 = sshll.u32 %s3961_s7, 4  ;;  %s628_s16 = int_to_ptr.hbm [resolvable:$true] %s627_s16  ;;  %s528_s17 = int_to_ptr.vmem [resolvable:$true] %s527_s17 }
  0x36   : > { %3311 = dma.hbm_to_vmem [thread:$0]  (!%p4134_p10), %s628_s16, 5120, %s630_s20, %s4146_s22, %s3951_s29, %s3951_s29, %s3952_s25  }
  0x37   : > { %s552_s16 = sshll.u32 %s4298_s11, 4  ;;  %s578_s4 = sshll.u32 %s4300_s13, 4  ;;  %s553_s16 = int_to_ptr.hbm [resolvable:$true] %s552_s16  ;;  %s579_s4 = int_to_ptr.hbm [resolvable:$true] %s578_s4 }
  0x38   : > { %3292 = dma.hbm_to_vmem [thread:$0]  (!%p4098_p6), %s526_s19, 32, %s528_s17, [#allocation17]  }
  0x39   : > { %s3962_s14 = smov [#allocation21]   ;;  %s3963_s25 = smov [#allocation24]  }
  0x3a   : > { %s554_s1 = sshll.u32 %s3962_s14, 4  ;;  %s580_s29 = sshll.u32 %s3963_s25, 4  ;;  %s555_s1 = int_to_ptr.vmem [resolvable:$true] %s554_s1  ;;  %s581_s29 = int_to_ptr.vmem [resolvable:$true] %s580_s29 }
  0x3b   : > { %3298 = dma.hbm_to_vmem [thread:$0]  (!%p4098_p6), %s553_s16, 128, %s555_s1, [#allocation20]  }
  0x3c   : > { %s4323_s15 = sld [smem:[#allocation41_spill]]  ;;  %s3964_s19 = smov [#allocation4]  }
  0x3d   : > { %3304 = dma.hbm_to_vmem [thread:$0]  (!%p4098_p6), %s579_s4, 128, %s581_s29, [#allocation23]  }
  0x3e   : > { %s605_s17 = sshll.u32 %s3964_s19, 4  ;;  %s650_s1 = sshll.u32 %s4289_s2, 4  ;;  %s606_s17 = int_to_ptr.vmem [resolvable:$true] %s605_s17  ;;  %s651_s1 = int_to_ptr.hbm [resolvable:$true] %s650_s1 }
  0x3f   : > { %s3965_s16 = smov 320   ;;  %s3966_s26 = smov 20  }
  0x40   : > { %s3967_s14 = smov [#allocation9]   ;;  %s673_s4 = sshll.u32 %s4290_s3, 4  ;;  %s674_s4 = int_to_ptr.hbm [resolvable:$true] %s673_s4 }
  0x41   : > { %s652_s25 = sshll.u32 %s3967_s14, 4  ;;  %s3968_s29 = smov [#allocation10]   ;;  %s653_s25 = int_to_ptr.vmem [resolvable:$true] %s652_s25 }
  0x42   : > { %s603_s7 = sshll.u32 %s4323_s15, 4  ;;  %s675_s28 = sshll.u32 %s3968_s29, 4  ;;  %s604_s7 = int_to_ptr.hbm [resolvable:$true] %s603_s7  ;;  %s676_s28 = int_to_ptr.vmem [resolvable:$true] %s675_s28 }
  0x43   : > { %3308 = dma.hbm_to_vmem [thread:$0]  (!%p4134_p10), %s604_s7, 640, %s606_s17, [#allocation5], %s3965_s16, %s3965_s16, %s3966_s26  }
  0x44   : > { %3314 = dma.hbm_to_vmem [thread:$0]  (!%p4134_p10), %s651_s1, 5120, %s653_s25, %s4146_s22, %s3965_s16, %s3965_s16, %s3966_s26  }
  0x45   : > { %s4324_s15 = sand.u32 1, %s3948_s23   ;;  %684 = sbr.rel (%p4087_p4) target bundleno = 1840 (0x730), region = 76 }
  0x46   : > { %s663_s19 = scalar_lea.sflag [#allocation11], %s4324_s15 }
  0x47   : > { %3317 = dma.hbm_to_vmem [thread:$0]  (!%p4134_p10), %s674_s4, 80, %s676_s28, %s663_s19  }
  0x4a   : > { %3899 = dma.done.wait (%p3322_p3), [#allocation5], 640  }
  0x4b   : > { %3901 = vsyncadd (%p3322_p3), [#allocation5], 4294966656  ;;  %s696_s22 = sand.u32 1, %s4078_s24  }
  0x4c   : > { %s697_s7 = scalar_lea.sflag [#allocation8], %s696_s22 }
  0x4d   : > { %3903 = dma.done.wait (%p3322_p3), %s697_s7, 10240  }
  0x4e   : > { %3905 = vsyncadd (%p3322_p3), %s697_s7, 4294957056  ;;  %s717_s5 = scalar_lea.sflag [#allocation11], %s696_s22 }
  0x4f   : > { %3907 = dma.done.wait (%p3322_p3), %s717_s5, 80  }
  0x50   : > { %3909 = vsyncadd (%p3322_p3), %s717_s5, 4294967216 }
  0x51   : > { %3911 = dma.done.wait (%p3322_p3), [#allocation11], 128  }
  0x52   : > { %3913 = vsyncadd (%p3322_p3), [#allocation11], 4294967168 }
  0x53   : > { %3915 = dma.done.wait (%p3322_p3), [#allocation14], 2176  }
  0x54   : > { %3917 = vsyncadd (%p3322_p3), [#allocation14], 4294965120 }
  0x55   : > { %3919 = dma.done.wait (%p3322_p3), [#allocation17], 2080  }
  0x56   : > { %3921 = vsyncadd (%p3322_p3), [#allocation17], 4294965216 }
  0x57   : > { %3923 = dma.done.wait (%p3322_p3), [#allocation20], 256  }
  0x58   : > { %3925 = vsyncadd (%p3322_p3), [#allocation20], 4294967040 }
  0x59   : > { %3927 = dma.done.wait (%p3322_p3), [#allocation23], 4224  }
  0x5a   : > { %3929 = vsyncadd (%p3322_p3), [#allocation23], 4294963072  ;;  %p842_p11 = scmp.eq.s32.totalorder %s3940_s21, 0 }
  0x5b   : > { %v3969_v0 = vmov (%p842_p11), 0.0  }
  0x5c   : > { %847 = sbr.rel (!%p842_p11) target bundleno = 97 (0x61), region = 132  ;;  %848 = vst [vmem:[#allocation2] sm:$0xff] (%p842_p11), %v3969_v0 }
  0x5d   : > { %849 = vst [vmem:[#allocation2 + $0x8] sm:$0xff] (%p842_p11), %v3969_v0 }
  0x61 PF: > { %p2587_p12 = scmp.ne.s32.totalorder %s3940_s21, 0 }
  0x63   : > { %852 = sbr.rel (%p2587_p12) target bundleno = 307 (0x133), region = 136 }
  0x68   : > { %v3099_v1 = vld [vmem:[#allocation7 + $0x38] sm:$0xff]  ;;  %v3098_v5 = vld [vmem:[#allocation7 + $0x30] sm:$0xff]  ;;  %v3097_v9 = vld [vmem:[#allocation7 + $0x28] sm:$0xff] }
  0x69   : > { %v3115_v2 = vld [vmem:[#allocation7 + $0xb8] sm:$0xff]  ;;  %1207 = vmatpush.bf16.msra.mxu0 %v3099_v1  ;;  %v3114_v6 = vld [vmem:[#allocation7 + $0xb0] sm:$0xff]  ;;  %v3113_v10 = vld [vmem:[#allocation7 + $0xa8] sm:$0xff] }
  0x6a   : > { %v3123_v3 = vld [vmem:[#allocation7 + $0xf8] sm:$0xff]  ;;  %1235 = vmatpush.bf16.msra.mxu2 %v3115_v2  ;;  %v3122_v7 = vld [vmem:[#allocation7 + $0xf0] sm:$0xff]  ;;  %v3121_v11 = vld [vmem:[#allocation7 + $0xe8] sm:$0xff] }
  0x6b   : > { %v3107_v4 = vld [vmem:[#allocation7 + $0x78] sm:$0xff]  ;;  %1249 = vmatpush.bf16.msra.mxu3 %v3123_v3  ;;  %v3106_v8 = vld [vmem:[#allocation7 + $0x70] sm:$0xff]  ;;  %v3105_v12 = vld [vmem:[#allocation7 + $0x68] sm:$0xff] }
  0x6c   : > { %1221 = vmatpush.bf16.msra.mxu1 %v3107_v4  ;;  %v3096_v13 = vld [vmem:[#allocation7 + $0x20] sm:$0xff]  ;;  %v3095_v17 = vld [vmem:[#allocation7 + $0x18] sm:$0xff]  ;;  %v3094_v21 = vld [vmem:[#allocation7 + $0x10] sm:$0xff] }
  0x6d   : > { %1208 = vmatpush.bf16.msra.mxu0 %v3098_v5  ;;  %v3112_v14 = vld [vmem:[#allocation7 + $0xa0] sm:$0xff]  ;;  %v3111_v18 = vld [vmem:[#allocation7 + $0x98] sm:$0xff]  ;;  %v3110_v22 = vld [vmem:[#allocation7 + $0x90] sm:$0xff] }
  0x6e   : > { %1236 = vmatpush.bf16.msra.mxu2 %v3114_v6  ;;  %v3120_v15 = vld [vmem:[#allocation7 + $0xe0] sm:$0xff]  ;;  %v3119_v19 = vld [vmem:[#allocation7 + $0xd8] sm:$0xff]  ;;  %v3118_v23 = vld [vmem:[#allocation7 + $0xd0] sm:$0xff] }
  0x6f   : > { %1250 = vmatpush.bf16.msra.mxu3 %v3122_v7  ;;  %v3104_v16 = vld [vmem:[#allocation7 + $0x60] sm:$0xff]  ;;  %v3103_v20 = vld [vmem:[#allocation7 + $0x58] sm:$0xff]  ;;  %v3102_v24 = vld [vmem:[#allocation7 + $0x50] sm:$0xff] }
  0x70   : > { %1222 = vmatpush.bf16.msra.mxu1 %v3106_v8  ;;  %v3093_v25 = vld [vmem:[#allocation7 + $0x8] sm:$0xff]  ;;  %v3092_v29 = vld [vmem:[#allocation7] sm:$0xff]  ;;  %v3131_v31 = vld [vmem:[#allocation7 + $0x138] sm:$0xff] }
  0x71   : > { %1209 = vmatpush.bf16.msra.mxu0 %v3097_v9  ;;  %v3109_v26 = vld [vmem:[#allocation7 + $0x88] sm:$0xff]  ;;  %v3108_v30 = vld [vmem:[#allocation7 + $0x80] sm:$0xff]  ;;  %v2598_v32 = vld [vmem:[#allocation4 + $0x8] sm:$0xf] }
  0x72   : > { %1237 = vmatpush.bf16.msra.mxu2 %v3113_v10  ;;  %v3117_v27 = vld [vmem:[#allocation7 + $0xc8] sm:$0xff]  ;;  %v2590_v34 = vld [vmem:[#allocation4] sm:$0xf]  ;;  %v3089_v35 = vld [vmem:[#allocation4 + $0x10] sm:$0xf0] }
  0x73   : > { %1251 = vmatpush.bf16.msra.mxu3 %v3121_v11  ;;  %v3101_v28 = vld [vmem:[#allocation7 + $0x48] sm:$0xff]  ;;  %v3116_v36 = vld [vmem:[#allocation7 + $0xc0] sm:$0xff]  ;;  %v3088_v37 = vld [vmem:[#allocation4 + $0xc] sm:$0xf]  ;;  %v2591_v43 = vor.u32 %v3089_v35, %v2590_v34 }
  0x74   : > { %1223 = vmatpush.bf16.msra.mxu1 %v3105_v12  ;;  %v3090_v33 = vld [vmem:[#allocation4 + $0x18] sm:$0xf0]  ;;  %v2600_v38 = vld [vmem:[#allocation4 + $0x1c] sm:$0xf0]  ;;  %v3100_v39 = vld [vmem:[#allocation7 + $0x40] sm:$0xff] }
  0x75   : > { %1210 = vmatpush.bf16.msra.mxu0 %v3096_v13  ;;  %v3087_v40 = vld [vmem:[#allocation4 + $0x4] sm:$0xf]  ;;  %v2592_v41 = vld [vmem:[#allocation4 + $0x14] sm:$0xf0]  ;;  %v2599_v42 = vor.u32 %v3090_v33, %v2598_v32  ;;  %v2603_v44 = vor.u32 %v3088_v37, %v2600_v38  ;;  %v3128_v48 = vld [vmem:[#allocation7 + $0x120] sm:$0xff] }
  0x76   : > { %1238 = vmatpush.bf16.msra.mxu2 %v3112_v14  ;;  %v3130_v45 = vld [vmem:[#allocation7 + $0x130] sm:$0xff]  ;;  %v2595_v46 = vor.u32 %v3087_v40, %v2592_v41  ;;  %v3129_v47 = vld [vmem:[#allocation7 + $0x128] sm:$0xff]  ;;  %v3127_v49 = vld [vmem:[#allocation7 + $0x118] sm:$0xff] }
  0x77   : > { %1252 = vmatpush.bf16.msra.mxu3 %v3120_v15  ;;  %v3126_v50 = vld [vmem:[#allocation7 + $0x110] sm:$0xff]  ;;  %v3125_v51 = vld [vmem:[#allocation7 + $0x108] sm:$0xff]  ;;  %v3124_v52 = vld [vmem:[#allocation7 + $0x100] sm:$0xff] }
  0x78   : > { %1224 = vmatpush.bf16.msra.mxu1 %v3104_v16  ;;  %v2606_v53 = vld [vmem:[#allocation4 + $0x10] sm:$0xf]  ;;  %v3091_v54 = vld [vmem:[#allocation4 + $0x20] sm:$0xf0]  ;;  %v853_v3 = vld [vmem:[#allocation2] sm:$0xff] }
  0x79   : > { %1211 = vmatpush.bf16.msra.mxu0 %v3095_v17  ;;  %v2607_v55 = vor.u32 %v3091_v54, %v2606_v53  ;;  %v854_v10 = vld [vmem:[#allocation2 + $0x8] sm:$0xff] }
  0x7a   : > { %1239 = vmatpush.bf16.msra.mxu2 %v3111_v18 }
  0x7b   : > { %1253 = vmatpush.bf16.msra.mxu3 %v3119_v19 }
  0x7c   : > { %1225 = vmatpush.bf16.msra.mxu1 %v3103_v20 }
  0x7d   : > { %1212 = vmatpush.bf16.msra.mxu0 %v3094_v21 }
  0x7e   : > { %1240 = vmatpush.bf16.msra.mxu2 %v3110_v22 }
  0x7f   : > { %1254 = vmatpush.bf16.msra.mxu3 %v3118_v23 }
  0x80   : > { %1226 = vmatpush.bf16.msra.mxu1 %v3102_v24 }
  0x81   : > { %1213 = vmatpush.bf16.msra.mxu0 %v3093_v25 }
  0x82   : > { %1241 = vmatpush.bf16.msra.mxu2 %v3109_v26 }
  0x83   : > { %1255 = vmatpush.bf16.msra.mxu3 %v3117_v27 }
  0x84   : > { %1227 = vmatpush.bf16.msra.mxu1 %v3101_v28 }
  0x85   : > { %1214 = vmatpush.bf16.msra.mxu0 %v3092_v29 }
  0x86   : > { %1242 = vmatpush.bf16.msra.mxu2 %v3108_v30 }
  0x87   : > { %1256 = vmatpush.bf16.msra.mxu3 %v3116_v36 }
  0x88   : > { %1228 = vmatpush.bf16.msra.mxu1 %v3100_v39  ;;  %1215 = vmatmul.bf16.vlgmr.msra.gmra.mxu0 %v2591_v43 }
  0x89   : > { %1263 = vmatpush.bf16.msrb.mxu0 %v3131_v31  ;;  %1243 = vmatmul.bf16.vlgmr.msra.gmra.mxu2 %v2599_v42 }
  0x8a   : > { %1257 = vmatmul.bf16.vlgmr.msra.gmra.mxu3 %v2603_v44 }
  0x8b   : > { %1229 = vmatmul.bf16.vlgmr.msra.gmra.mxu1 %v2595_v46 }
  0x8d   : > { %1264 = vmatpush.bf16.msrb.mxu0 %v3130_v45 }
  0x91   : > { %1265 = vmatpush.bf16.msrb.mxu0 %v3129_v47 }
  0x95   : > { %1266 = vmatpush.bf16.msrb.mxu0 %v3128_v48 }
  0x99   : > { %1267 = vmatpush.bf16.msrb.mxu0 %v3127_v49 }
  0x9d   : > { %1268 = vmatpush.bf16.msrb.mxu0 %v3126_v50 }
  0xa1   : > { %1269 = vmatpush.bf16.msrb.mxu0 %v3125_v51 }
  0xa5   : > { %1270 = vmatpush.bf16.msrb.mxu0 %v3124_v52 }
  0xa8   : > { %1271 = vmatmul.bf16.vlgmr.msrb.gmra.mxu0 %v2607_v55 }
 0x105   : > { %v1216_v56 = vpop.f32.mrf.mxu0 }
 0x108   : > { %v1230_v57 = vpop.f32.mrf.mxu1 }
 0x109   : > { %v1231_v59 = vadd.f32 %v1230_v57, %v1216_v56 }
 0x10c   : > { %v1244_v58 = vpop.f32.mrf.mxu2 }
 0x10d   : > { %v1218_v60 = vpop.f32.mrf.mxu0  ;;  %v1258_v61 = vpop.f32.mrf.mxu3  ;;  %v1245_v62 = vadd.f32 %v1244_v58, %v1231_v59 }
 0x10f   : > { %v1259_v0 = vadd.f32 %v1258_v61, %v1245_v62 }
 0x110   : > { %v1232_v63 = vpop.f32.mrf.mxu1 }
 0x111   : > { %v1233_v1 = vadd.f32 %v1232_v63, %v1218_v60 }
 0x114   : > { %v1246_v2 = vpop.f32.mrf.mxu2 }
 0x115   : > { %v1247_v6 = vadd.f32 %v1246_v2, %v1233_v1  ;;  %v1260_v8 = vpop.f32.mrf.mxu3 }
 0x117   : > { %v1261_v9 = vadd.f32 %v1260_v8, %v1247_v6 }
 0x125   : > { %v1272_v4 = vpop.f32.mrf.mxu0 }
 0x126   : > { %v1273_v5 = vadd.f32 %v1272_v4, %v1259_v0 }
 0x128   : > { %v1277_v7 = vadd.f32 %v1273_v5, %v853_v3 }
 0x12a   : > { %1279 = vst [vmem:[#allocation2] sm:$0xff] %v1277_v7 }
 0x12d   : > { %v1274_v11 = vpop.f32.mrf.mxu0 }
 0x12e   : > { %v1275_v12 = vadd.f32 %v1274_v11, %v1261_v9 }
 0x130   : > { %v1278_v13 = vadd.f32 %v1275_v12, %v854_v10 }
 0x132   : > { %1280 = vst [vmem:[#allocation2 + $0x8] sm:$0xff] %v1278_v13 }
 0x133 PF: > { %1282 = sbr.rel (!%p842_p11) target bundleno = 1615 (0x64f), region = 140  ;;  %v3140_v14 = vld [vmem:[#allocation15 + $0x38] sm:$0xff] (%p842_p11)  ;;  %v3139_v16 = vld [vmem:[#allocation15 + $0x30] sm:$0xff] (%p842_p11)  ;;  %v3138_v18 = vld [vmem:[#allocation15 + $0x28] sm:$0xff] (%p842_p11)  ;;  %vm1465_vm0 = vcmask (%p842_p11), 392192   ;;  %vm1523_vm1 = vcmask (%p842_p11), 64512  }
 0x134   : > { %v3149_v15 = vld [vmem:[#allocation15 + $0x78] sm:$0xff] (%p842_p11)  ;;  %1362 = vmatpush.bf16.msra.mxu0 (%p842_p11), %v3140_v14  ;;  %v3148_v17 = vld [vmem:[#allocation15 + $0x70] sm:$0xff] (%p842_p11)  ;;  %v3147_v19 = vld [vmem:[#allocation15 + $0x68] sm:$0xff] (%p842_p11) }
 0x135   : > { %1449 = vmatpush.bf16.msra.mxu1 (%p842_p11), %v3149_v15  ;;  %v3137_v20 = vld [vmem:[#allocation15 + $0x20] sm:$0xff] (%p842_p11)  ;;  %v3136_v22 = vld [vmem:[#allocation15 + $0x18] sm:$0xff] (%p842_p11)  ;;  %v3135_v24 = vld [vmem:[#allocation15 + $0x10] sm:$0xff] (%p842_p11) }
 0x136   : > { %v3146_v21 = vld [vmem:[#allocation15 + $0x60] sm:$0xff] (%p842_p11)  ;;  %v3145_v23 = vld [vmem:[#allocation15 + $0x58] sm:$0xff] (%p842_p11)  ;;  %v3144_v25 = vld [vmem:[#allocation15 + $0x50] sm:$0xff] (%p842_p11) }
 0x137   : > { %v3134_v26 = vld [vmem:[#allocation15 + $0x8] sm:$0xff] (%p842_p11)  ;;  %v3133_v28 = vld [vmem:[#allocation15] sm:$0xff] (%p842_p11)  ;;  %v3132_v30 = vld [vmem:[#allocation12] sm:$0xff] (%p842_p11) }
 0x138   : > { %1363 = vmatpush.bf16.msra.mxu0 %v3139_v16  ;;  %v3143_v27 = vld [vmem:[#allocation15 + $0x48] sm:$0xff]  ;;  %v3142_v29 = vld [vmem:[#allocation15 + $0x40] sm:$0xff]  ;;  %v3141_v31 = vld [vmem:[#allocation13] sm:$0xff] }
 0x139   : > { %1450 = vmatpush.bf16.msra.mxu1 %v3148_v17  ;;  %v1463_v32 = vld [vmem:[%s4296_s9] sm:$0xff]  ;;  %v4236_v35 = vld [vmem:[#allocation24] sm:$0xff]  ;;  %v1285_v43 = vld [vmem:[#allocation2 + $0x8] sm:$0xff] }
 0x13a   : > { %1636 = vxpose.xlu1.b32.start.end [1/1] (short) (narrow) %v1463_v32, 48  ;;  %v1394_v36 = vperm.slane %v4236_v35, 2  ;;  %v1307_v40 = vperm.slane %v4236_v35, 1  ;;  %v1286_v42 = vperm.slane %v4236_v35, 0  ;;  %v1284_v45 = vld [vmem:[#allocation2] sm:$0xff]  ;;  %v1506_v49 = vld [vmem:[#allocation22 + $0x78] sm:$0xff] }
 0x13b   : > { %v1505_v50 = vld [vmem:[#allocation22 + $0x70] sm:$0xff]  ;;  %1548 = vmatpush.msra.mxu3 %v1506_v49  ;;  %v1504_v51 = vld [vmem:[#allocation22 + $0x68] sm:$0xff]  ;;  %v1503_v52 = vld [vmem:[#allocation22 + $0x60] sm:$0xff]  ;;  %v1547_v6 = vperm.slane %v4236_v35, 3 }
 0x13c   : > { %1364 = vmatpush.bf16.msra.mxu0 %v3138_v18  ;;  %v1288_v47 = vadd.f32 %v1286_v42, %v1285_v43  ;;  %v1287_v48 = vadd.f32 %v1286_v42, %v1284_v45  ;;  %v1502_v53 = vld [vmem:[#allocation22 + $0x58] sm:$0xff]  ;;  %v1501_v54 = vld [vmem:[#allocation22 + $0x50] sm:$0xff]  ;;  %v1500_v55 = vld [vmem:[#allocation22 + $0x48] sm:$0xff] }
 0x13d   : > { %1451 = vmatpush.bf16.msra.mxu1 %v3147_v19  ;;  %1549 = vmatpush.msra.mxu3 %v1505_v50  ;;  %v1499_v56 = vld [vmem:[#allocation22 + $0x40] sm:$0xff]  ;;  %v1498_v57 = vld [vmem:[#allocation22 + $0x38] sm:$0xff]  ;;  %v1497_v58 = vld [vmem:[#allocation22 + $0x30] sm:$0xff] }
 0x13e   : > { %v1496_v59 = vld [vmem:[#allocation22 + $0x28] sm:$0xff]  ;;  %v1495_v60 = vld [vmem:[#allocation22 + $0x20] sm:$0xff]  ;;  %v1494_v61 = vld [vmem:[#allocation22 + $0x18] sm:$0xff] }
 0x13f   : > { %1550 = vmatpush.msra.mxu3 %v1504_v51  ;;  %v1493_v62 = vld [vmem:[#allocation22 + $0x10] sm:$0xff]  ;;  %v1492_v0 = vld [vmem:[#allocation22 + $0x8] sm:$0xff]  ;;  %v1490_v3 = vld [vmem:[#allocation21] sm:$0xff]  ;;  %v1634_v51 = vperm.slane %v4236_v35, 6 }
 0x140   : > { %1365 = vmatpush.bf16.msra.mxu0 %v3137_v20  ;;  %v1464_v63 = vld [vmem:[#allocation19] sm:$0xff]  ;;  %v1491_v4 = vld [vmem:[#allocation22] sm:$0xff]  ;;  %v1522_v10 = vld [vmem:[#allocation22 + $0xf8] sm:$0xff] }
 0x141   : > { %1452 = vmatpush.bf16.msra.mxu1 %v3146_v21  ;;  %1551 = vmatpush.msra.mxu3 %v1503_v52  ;;  %v1521_v11 = vld [vmem:[#allocation22 + $0xf0] sm:$0xff]  ;;  %v1520_v12 = vld [vmem:[#allocation22 + $0xe8] sm:$0xff]  ;;  %v1519_v13 = vld [vmem:[#allocation22 + $0xe0] sm:$0xff] }
 0x142   : > { %v1518_v14 = vld [vmem:[#allocation22 + $0xd8] sm:$0xff]  ;;  %v1517_v15 = vld [vmem:[#allocation22 + $0xd0] sm:$0xff]  ;;  %v1516_v16 = vld [vmem:[#allocation22 + $0xc8] sm:$0xff] }
 0x143   : > { %1552 = vmatpush.msra.mxu3 %v1502_v53  ;;  %v1515_v17 = vld [vmem:[#allocation22 + $0xc0] sm:$0xff]  ;;  %v1514_v18 = vld [vmem:[#allocation22 + $0xb8] sm:$0xff]  ;;  %v1513_v19 = vld [vmem:[#allocation22 + $0xb0] sm:$0xff] }
 0x144   : > { %1366 = vmatpush.bf16.msra.mxu0 %v3136_v22  ;;  %v1512_v20 = vld [vmem:[#allocation22 + $0xa8] sm:$0xff]  ;;  %v1511_v21 = vld [vmem:[#allocation22 + $0xa0] sm:$0xff]  ;;  %v1510_v22 = vld [vmem:[#allocation22 + $0x98] sm:$0xff] }
 0x145   : > { %1453 = vmatpush.bf16.msra.mxu1 %v3145_v23  ;;  %1553 = vmatpush.msra.mxu3 %v1501_v54  ;;  %v1509_v23 = vld [vmem:[#allocation22 + $0x90] sm:$0xff] }
 0x147   : > { %1554 = vmatpush.msra.mxu3 %v1500_v55  ;;  %v2879_v55 = vld [vmem:[#allocation16 + $0x70] sm:$0xf] }
 0x148   : > { %1367 = vmatpush.bf16.msra.mxu0 %v3135_v24  ;;  %v1508_v24 = vld [vmem:[#allocation22 + $0x88] sm:$0xff] }
 0x149   : > { %1454 = vmatpush.bf16.msra.mxu1 %v3144_v25  ;;  %1555 = vmatpush.msra.mxu3 %v1499_v56  ;;  %v1507_v25 = vld [vmem:[#allocation22 + $0x80] sm:$0xff] }
 0x14a   : > { %v3157_v56 = vld [vmem:[#allocation16 + $0x74] sm:$0xf0] }
 0x14b   : > { %1556 = vmatpush.msra.mxu3 %v1498_v57  ;;  %v2875_v57 = vld [vmem:[#allocation16 + $0x60] sm:$0xf] }
 0x14c   : > { %1368 = vmatpush.bf16.msra.mxu0 %v3134_v26 }
 0x14d   : > { %1455 = vmatpush.bf16.msra.mxu1 %v3143_v27  ;;  %1557 = vmatpush.msra.mxu3 %v1497_v58  ;;  %v1589_v27 = vperm.slane %v4236_v35, 4  ;;  %v2880_v58 = vor.u32 %v3157_v56, %v2879_v55  ;;  %v3409_v56 = vld [vmem:[#allocation18 + $0x1] ss:$0 sm:$0xff] }
 0x14f   : > { %1558 = vmatpush.msra.mxu3 %v1496_v59  ;;  %v3156_v59 = vld [vmem:[#allocation16 + $0x64] sm:$0xf0] }
 0x150   : > { %1369 = vmatpush.bf16.msra.mxu0 %v3133_v28 }
 0x151   : > { %1456 = vmatpush.bf16.msra.mxu1 %v3142_v29  ;;  %1559 = vmatpush.msra.mxu3 %v1495_v60  ;;  %v2876_v60 = vor.u32 %v3156_v59, %v2875_v57 }
 0x153   : > { %1370 = vmatmul.bf16.vlgmr.msra.gmra.mxu0 %v3132_v30  ;;  %1560 = vmatpush.msra.mxu3 %v1494_v61  ;;  %v2871_v61 = vld [vmem:[#allocation16 + $0x50] sm:$0xf] }
 0x154   : > { %1457 = vmatmul.bf16.vlgmr.msra.gmra.mxu1 %v3141_v31  ;;  %1795 = vmatpush.bf16.msrb.mxu0 %v2880_v58 }
 0x155   : > { %1561 = vmatpush.msra.mxu3 %v1493_v62  ;;  %v3155_v62 = vld [vmem:[#allocation16 + $0x54] sm:$0xf0] }
 0x157   : > { %1562 = vmatpush.msra.mxu3 %v1492_v0 }
 0x158   : > { %1796 = vmatpush.bf16.msrb.mxu0 %v2876_v60 }
 0x159   : > { %1563 = vmatpush.msra.mxu3 %v1491_v4 }
 0x1d0   : > { %v1371_v33 = vpop.f32.mrf.mxu0 }
 0x1d1   : > { %v1458_v34 = vpop.f32.mrf.mxu1  ;;  %v1372_v46 = vadd.f32 %v1371_v33, %v1307_v40 }
 0x1d2   : > { %v1459_v41 = vadd.f32 %v1458_v34, %v1394_v36 }
 0x1d8   : > { %v1373_v39 = vpop.f32.mrf.mxu0 }
 0x1d9   : > { %v1460_v37 = vpop.f32.mrf.mxu1  ;;  %v1374_v44 = vadd.f32 %v1373_v39, %v1307_v40 }
 0x1da   : > { %v1461_v38 = vadd.f32 %v1460_v37, %v1394_v36 }
 0x1dc   : > { %1479 = vmatpush.msra.mxu2 %v1461_v38 }
 0x1de   : > { %1480 = vmatpush.msra.mxu2 %v1459_v41  ;;  %v1652_v39 = vpop.trf.xlu1 }
 0x1e0   : > { %1481 = vmatpush.msra.mxu2 %v1374_v44 }
 0x1e2   : > { %1482 = vmatpush.msra.mxu2 %v1372_v46 }
 0x1e4   : > { %1483 = vmatpush.msra.mxu2 %v1288_v47 }
 0x1e6   : > { %1484 = vmatpush.msra.mxu2 %v1287_v48  ;;  %v1653_v45 = vpop.trf.xlu1  ;;  %v1632_v48 = vperm.slane %v4236_v35, 5  ;;  %v2872_v35 = vor.u32 %v3155_v62, %v2871_v61 }
 0x1e7   : > { %2840 = vmatmul.msk.f32.vlgmr.msra.gmra.mxu2 %vm1465_vm0, %v1463_v32 }
 0x1e8   : > { %1797 = vmatpush.bf16.msrb.mxu0 %v2872_v35 }
 0x1ee   : > { %v1654_v54 = vpop.trf.xlu1 }
 0x26a   : > { %v1486_v1 = vpop.f32.mrf.mxu2 }
 0x26b   : > { %v1489_v2 = vadd.f32 %v1486_v1, %v1464_v63  ;;  %v1655_v63 = vpop.trf.xlu1 }
 0x26d   : > { %1542 = vmatpush.msrb.mxu2 %v1489_v2  ;;  %v2867_v2 = vld [vmem:[#allocation16 + $0x40] sm:$0xf] }
 0x26e   : > { %2841 = vmatmul.msk.f32.vlgmr.msrb.gmra.mxu2 %vm1523_vm1, %v1490_v3 }
 0x273   : > { %v1656_v0 = vpop.trf.xlu1 }
 0x27b   : > { %v1657_v1 = vpop.trf.xlu1 }
 0x2f1   : > { %v1544_v5 = vpop.f32.mrf.mxu2 }
 0x2f2   : > { %1564 = vmatmul.f32.vlgmr.msra.gmra.mxu3 %v1544_v5  ;;  %v2863_v5 = vld [vmem:[#allocation16 + $0x30] sm:$0xf] }
 0x375   : > { %v1565_v7 = vpop.f32.mrf.mxu3 }
 0x376   : > { %v1566_v8 = vadd.f32 %v1565_v7, %v1547_v6  ;;  %v3153_v6 = vld [vmem:[#allocation16 + $0x34] sm:$0xf0]  ;;  %v2911_v7 = vld [vmem:[#allocation16 + $0x74] sm:$0xf] }
 0x378   : > { %v1568_v9 = vmax.f32 %v1566_v8, 0.0  ;;  %v2864_v8 = vor.u32 %v3153_v6, %v2863_v5 }
 0x37a   : > { %1584 = vmatpush.msra.mxu2 %v1568_v9  ;;  %v3165_v9 = vld [vmem:[#allocation16 + $0x78] sm:$0xf0] }
 0x37b   : > { %2842 = vmatmul.msk.f32.vlgmr.msra.gmra.mxu2 %vm1523_vm1, %v1490_v3  ;;  %v3154_v3 = vld [vmem:[#allocation16 + $0x44] sm:$0xf0] }
 0x37c   : > { %1590 = vmatpush.msrb.mxu2 %v1522_v10  ;;  %v2868_v4 = vor.u32 %v3154_v3, %v2867_v2  ;;  %v2912_v10 = vor.u32 %v3165_v9, %v2911_v7 }
 0x37e   : > { %1591 = vmatpush.msrb.mxu2 %v1521_v11  ;;  %1798 = vmatpush.bf16.msrb.mxu0 %v2868_v4  ;;  %v2859_v11 = vld [vmem:[#allocation16 + $0x20] sm:$0xf] }
 0x37f   : > { %1879 = vmatpush.bf16.msrb.mxu1 %v2912_v10 }
 0x380   : > { %1592 = vmatpush.msrb.mxu2 %v1520_v12  ;;  %v3152_v12 = vld [vmem:[#allocation16 + $0x24] sm:$0xf0] }
 0x382   : > { %1593 = vmatpush.msrb.mxu2 %v1519_v13  ;;  %1799 = vmatpush.bf16.msrb.mxu0 %v2864_v8  ;;  %v2907_v13 = vld [vmem:[#allocation16 + $0x64] sm:$0xf] }
 0x384   : > { %1594 = vmatpush.msrb.mxu2 %v1518_v14  ;;  %v2860_v14 = vor.u32 %v3152_v12, %v2859_v11 }
 0x386   : > { %1595 = vmatpush.msrb.mxu2 %v1517_v15  ;;  %v3164_v15 = vld [vmem:[#allocation16 + $0x68] sm:$0xf0]  ;;  %1800 = vmatpush.bf16.msrb.mxu0 %v2860_v14 }
 0x388   : > { %1596 = vmatpush.msrb.mxu2 %v1516_v16  ;;  %v2908_v16 = vor.u32 %v3164_v15, %v2907_v13 }
 0x38a   : > { %1597 = vmatpush.msrb.mxu2 %v1515_v17  ;;  %v2855_v17 = vld [vmem:[#allocation16 + $0x10] sm:$0xf]  ;;  %1880 = vmatpush.bf16.msrb.mxu1 %v2908_v16 }
 0x38c   : > { %1598 = vmatpush.msrb.mxu2 %v1514_v18  ;;  %v3151_v18 = vld [vmem:[#allocation16 + $0x14] sm:$0xf0] }
 0x38e   : > { %1599 = vmatpush.msrb.mxu2 %v1513_v19  ;;  %v2903_v19 = vld [vmem:[#allocation16 + $0x54] sm:$0xf] }
 0x390   : > { %1600 = vmatpush.msrb.mxu2 %v1512_v20  ;;  %v2856_v20 = vor.u32 %v3151_v18, %v2855_v17 }
 0x392   : > { %1601 = vmatpush.msrb.mxu2 %v1511_v21  ;;  %v3163_v21 = vld [vmem:[#allocation16 + $0x58] sm:$0xf0]  ;;  %1801 = vmatpush.bf16.msrb.mxu0 %v2856_v20 }
 0x394   : > { %1602 = vmatpush.msrb.mxu2 %v1510_v22  ;;  %v2904_v22 = vor.u32 %v3163_v21, %v2903_v19 }
 0x396   : > { %1603 = vmatpush.msrb.mxu2 %v1509_v23  ;;  %1881 = vmatpush.bf16.msrb.mxu1 %v2904_v22  ;;  %v2851_v23 = vld [vmem:[#allocation16] sm:$0xf] }
 0x398   : > { %1604 = vmatpush.msrb.mxu2 %v1508_v24  ;;  %v3150_v24 = vld [vmem:[#allocation16 + $0x4] sm:$0xf0] }
 0x39a   : > { %1605 = vmatpush.msrb.mxu2 %v1507_v25  ;;  %v2899_v25 = vld [vmem:[#allocation16 + $0x44] sm:$0xf] }
 0x3fe   : > { %v1586_v26 = vpop.f32.mrf.mxu2 }
 0x3ff   : > { %1606 = vmatmul.f32.vlgmr.msrb.gmra.mxu2 %v1586_v26  ;;  %v2852_v26 = vor.u32 %v3150_v24, %v2851_v23 }
 0x401   : > { %1802 = vmatpush.bf16.msrb.mxu0 %v2852_v26 }
 0x482   : > { %v1607_v28 = vpop.f32.mrf.mxu2 }
 0x483   : > { %v1608_v29 = vadd.f32 %v1607_v28, %v1589_v27  ;;  %v3162_v27 = vld [vmem:[#allocation16 + $0x48] sm:$0xf0] }
 0x484   : > { %v2900_v28 = vor.u32 %v3162_v27, %v2899_v25 }
 0x485   : > { %1610 = vadd.xlane.f32.xlu0 %v1608_v29  ;;  %v1613_v30 = vmul.f32 %v1608_v29, %v1608_v29 }
 0x486   : > { %1882 = vmatpush.bf16.msrb.mxu1 %v2900_v28 }
 0x48d   : > { %1614 = vadd.xlane.f32.xlu0 %v1613_v30  ;;  %v3161_v30 = vld [vmem:[#allocation16 + $0x38] sm:$0xf0] }
 0x4f8   : > { %v1611_v31 = vpop.xlane.xlu0 %1610 }
 0x4f9   : > { %v1612_v32 = vmul.f32 0.015625, %v1611_v31 }
 0x4fb   : > { %v1617_v34 = vmul.f32 %v1612_v32, %v1612_v32  ;;  %v1619_v47 = vsub.f32 %v1608_v29, %v1612_v32  ;;  %v2895_v29 = vld [vmem:[#allocation16 + $0x34] sm:$0xf]  ;;  %v2891_v32 = vld [vmem:[#allocation16 + $0x24] sm:$0xf] }
 0x4fc   : > { %v2896_v31 = vor.u32 %v3161_v30, %v2895_v29 }
 0x4fe   : > { %1883 = vmatpush.bf16.msrb.mxu1 %v2896_v31 }
 0x500   : > { %v1615_v33 = vpop.xlane.xlu0 %1614 }
 0x501   : > { %v1616_v36 = vmul.f32 0.015625, %v1615_v33  ;;  %v3160_v33 = vld [vmem:[#allocation16 + $0x28] sm:$0xf0] }
 0x503   : > { %v1618_v37 = vsub.f32 %v1616_v36, %v1617_v34  ;;  %v2892_v34 = vor.u32 %v3160_v33, %v2891_v32  ;;  %v2887_v36 = vld [vmem:[#allocation16 + $0x14] sm:$0xf] }
 0x505   : > { %v1620_v38 = vadd.f32 1e-05, %v1618_v37  ;;  %v3159_v37 = vld [vmem:[#allocation16 + $0x18] sm:$0xf0]  ;;  %1884 = vmatpush.bf16.msrb.mxu1 %v2892_v34 }
 0x507   : > { %3410 = vrsqrt.f32 %v1620_v38  ;;  %vm1627_vm3 = vweird.f32 %v1620_v38 }
 0x50d   : > { %v3411_v40 = vpop.eup %3410 }
 0x50e   : > { %v1622_v41 = vmul.f32 %v3411_v40, %v1620_v38  ;;  %vm1628_vm2 = vweird.f32 %v3411_v40  ;;  %v2888_v38 = vor.u32 %v3159_v37, %v2887_v36 }
 0x50f   : > { %vm1629_vm4 = vmor %vm1627_vm3, %vm1628_vm2 }
 0x510   : > { %v1623_v42 = vmul.f32 %v3411_v40, %v1622_v41  ;;  %1885 = vmatpush.bf16.msrb.mxu1 %v2888_v38 }
 0x512   : > { %v1624_v43 = vmul.f32 0.5, %v1623_v42 }
 0x514   : > { %v1625_v44 = vsub.f32 1.5, %v1624_v43 }
 0x516   : > { %v1626_v46 = vmul.f32 %v3411_v40, %v1625_v44 }
 0x518   : > { %v1630_v49 = vsel %vm1629_vm4, %v3411_v40, %v1626_v46  ;;  %v3158_v40 = vld [vmem:[#allocation16 + $0x8] sm:$0xf0] }
 0x519   : > { %v1631_v50 = vmul.f32 %v1630_v49, %v1619_v47 }
 0x51b   : > { %v1633_v52 = vmul.f32 %v1632_v48, %v1631_v50 }
 0x51d   : > { %v1635_v53 = vadd.f32 %v1634_v51, %v1633_v52  ;;  %v3408_v51 = vld [vmem:[#allocation18] ss:$0 sm:$0xff] }
 0x51f   : > { %1701 = vmatpush.msra.mxu2 %v1635_v53  ;;  %3212 = vmatpush.msrb.mxu3 %v1635_v53 }
 0x520   : > { %2843 = vmatmul.msk.f32.vlgmr.msra.gmra.mxu2 %vm1523_vm1, %v1652_v39  ;;  %2844 = vmatmul.msk.f32.vlgmr.msrb.gmra.mxu3 %vm1523_vm1, %v1653_v45  ;;  %v2883_v39 = vld [vmem:[#allocation16 + $0x4] sm:$0xf] }
 0x521   : > { %v2884_v41 = vor.u32 %v3158_v40, %v2883_v39 }
 0x523   : > { %1886 = vmatpush.bf16.msrb.mxu1 %v2884_v41 }
 0x528   : > { %2845 = vmatmul.msk.f32.gmra.mxu3 %vm1523_vm1, %v1654_v54 }
 0x530   : > { %2846 = vmatmul.msk.f32.gmra.mxu3 %vm1523_vm1, %v1655_v63 }
 0x538   : > { %2847 = vmatmul.msk.f32.gmra.mxu3 %vm1523_vm1, %v1656_v0 }
 0x540   : > { %2848 = vmatmul.msk.f32.gmra.mxu3 %vm1523_vm1, %v1657_v1 }
 0x5a3   : > { %v1703_v42 = vpop.f32.mrf.mxu2  ;;  %v1706_v43 = vpop.f32.mrf.mxu3 }
 0x5a4   : > { %v3210_v44 = vpack.c.bf16 %v1706_v43, %v1703_v42 }
 0x5a6   : > { %3211 = vst [vmem:[#allocation3] sm:$0xff] %v3210_v44  }
 0x5ab   : > { %v1709_v45 = vpop.f32.mrf.mxu3 }
 0x5b3   : > { %v1712_v46 = vpop.f32.mrf.mxu3 }
 0x5b4   : > { %v1725_v47 = vpack.c.bf16 %v1712_v46, %v1709_v45 }
 0x5b6   : > { %1803 = vmatmul.bf16.vlgmr.msrb.gmra.mxu0 %v1725_v47 }
 0x5bb   : > { %v1715_v48 = vpop.f32.mrf.mxu3 }
 0x5c3   : > { %v1718_v49 = vpop.f32.mrf.mxu3 }
 0x5c4   : > { %v1726_v50 = vpack.c.bf16 %v1718_v49, %v1715_v48 }
 0x5c6   : > { %1887 = vmatmul.bf16.vlgmr.msrb.gmra.mxu1 %v1726_v50 }
 0x633   : > { %v1804_v52 = vpop.f32.mrf.mxu0 }
 0x634   : > { %v1805_v53 = vadd.f32 %v3408_v51, %v1804_v52 }
 0x636   : > { %1809 = vst [vmem:[#allocation26] sm:$0xff] %v1805_v53 }
 0x63b   : > { %v1806_v54 = vpop.f32.mrf.mxu0 }
 0x63c   : > { %v1807_v55 = vadd.f32 %v3408_v51, %v1806_v54 }
 0x63e   : > { %1810 = vst [vmem:[#allocation26 + $0x8] sm:$0xff] %v1807_v55 }
 0x643   : > { %v1888_v57 = vpop.f32.mrf.mxu1 }
 0x644   : > { %v1889_v58 = vadd.f32 %v3409_v56, %v1888_v57 }
 0x646   : > { %1893 = vst [vmem:[#allocation28] sm:$0xff] %v1889_v58 }
 0x64b   : > { %v1890_v59 = vpop.f32.mrf.mxu1 }
 0x64c   : > { %v1891_v60 = vadd.f32 %v3409_v56, %v1890_v59 }
 0x64e   : > { %1894 = vst [vmem:[#allocation28 + $0x8] sm:$0xff] %v1891_v60 }
 0x64f PF: > { %p2913_p13 = scmp.ne.s32.totalorder %s3940_s21, 1 }
 0x651   : > { %1898 = sbr.rel (%p2913_p13) target bundleno = 1825 (0x721), region = 144 }
 0x656   : > { %v3060_v61 = vld [vmem:[#allocation9 + $0x118] sm:$0xf]  ;;  %v3204_v62 = vld [vmem:[#allocation9 + $0x128] sm:$0xf0]  ;;  %v3040_v35 = vld [vmem:[#allocation9 + $0xf0] sm:$0xf] }
 0x657   : > { %v3061_v63 = vor.u32 %v3204_v62, %v3060_v61  ;;  %v3199_v0 = vld [vmem:[#allocation9 + $0x100] sm:$0xf0]  ;;  %v3068_v1 = vld [vmem:[#allocation9 + $0x120] sm:$0xf]  ;;  %v3205_v3 = vld [vmem:[#allocation9 + $0x130] sm:$0xf0] }
 0x658   : > { %v3041_v2 = vor.u32 %v3199_v0, %v3040_v35  ;;  %v3203_v4 = vld [vmem:[#allocation9 + $0x124] sm:$0xf]  ;;  %v3070_v5 = vld [vmem:[#allocation9 + $0x134] sm:$0xf0]  ;;  %v3020_v6 = vld [vmem:[#allocation9 + $0xc8] sm:$0xf]  ;;  %v3069_v8 = vor.u32 %v3205_v3, %v3068_v1 }
 0x659   : > { %2175 = vmatpush.bf16.msra.mxu0 %v3061_v63  ;;  %v3194_v7 = vld [vmem:[#allocation9 + $0xd8] sm:$0xf0]  ;;  %v3073_v9 = vor.u32 %v3203_v4, %v3070_v5  ;;  %v3048_v10 = vld [vmem:[#allocation9 + $0xf8] sm:$0xf]  ;;  %v3200_v11 = vld [vmem:[#allocation9 + $0x108] sm:$0xf0] }
 0x65a   : > { %v3198_v12 = vld [vmem:[#allocation9 + $0xfc] sm:$0xf]  ;;  %v3050_v13 = vld [vmem:[#allocation9 + $0x10c] sm:$0xf0]  ;;  %v3000_v14 = vld [vmem:[#allocation9 + $0xa0] sm:$0xf]  ;;  %2203 = vmatpush.bf16.msra.mxu2 %v3069_v8  ;;  %v3049_v15 = vor.u32 %v3200_v11, %v3048_v10  ;;  %v3021_v18 = vor.u32 %v3194_v7, %v3020_v6 }
 0x65b   : > { %2217 = vmatpush.bf16.msra.mxu3 %v3073_v9  ;;  %v3053_v16 = vor.u32 %v3198_v12, %v3050_v13  ;;  %v3202_v17 = vld [vmem:[#allocation9 + $0x11c] sm:$0xf]  ;;  %v3062_v19 = vld [vmem:[#allocation9 + $0x12c] sm:$0xf0]  ;;  %v3195_v21 = vld [vmem:[#allocation9 + $0xe0] sm:$0xf0] }
 0x65c   : > { %v3028_v20 = vld [vmem:[#allocation9 + $0xd0] sm:$0xf]  ;;  %v3189_v22 = vld [vmem:[#allocation9 + $0xb0] sm:$0xf0]  ;;  %v3065_v23 = vor.u32 %v3202_v17, %v3062_v19  ;;  %v3030_v25 = vld [vmem:[#allocation9 + $0xe4] sm:$0xf0] }
 0x65d   : > { %2176 = vmatpush.bf16.msra.mxu0 %v3041_v2  ;;  %v3193_v24 = vld [vmem:[#allocation9 + $0xd4] sm:$0xf]  ;;  %v3042_v27 = vld [vmem:[#allocation9 + $0x104] sm:$0xf0]  ;;  %v2980_v28 = vld [vmem:[#allocation9 + $0x78] sm:$0xf]  ;;  %v3029_v29 = vor.u32 %v3195_v21, %v3028_v20  ;;  %v3001_v32 = vor.u32 %v3189_v22, %v3000_v14 }
 0x65e   : > { %v3197_v26 = vld [vmem:[#allocation9 + $0xf4] sm:$0xf]  ;;  %2204 = vmatpush.bf16.msra.mxu2 %v3049_v15  ;;  %v3033_v30 = vor.u32 %v3193_v24, %v3030_v25  ;;  %v3008_v31 = vld [vmem:[#allocation9 + $0xa8] sm:$0xf]  ;;  %2189 = vmatpush.bf16.msra.mxu1 %v3065_v23  ;;  %v3190_v34 = vld [vmem:[#allocation9 + $0xb8] sm:$0xf0] }
 0x65f   : > { %2218 = vmatpush.bf16.msra.mxu3 %v3053_v16  ;;  %v3045_v33 = vor.u32 %v3197_v26, %v3042_v27  ;;  %v3188_v36 = vld [vmem:[#allocation9 + $0xac] sm:$0xf]  ;;  %v3010_v37 = vld [vmem:[#allocation9 + $0xbc] sm:$0xf0]  ;;  %v2960_v41 = vld [vmem:[#allocation9 + $0x50] sm:$0xf]  ;;  %v3009_v42 = vor.u32 %v3190_v34, %v3008_v31 }
 0x660   : > { %v3184_v38 = vld [vmem:[#allocation9 + $0x88] sm:$0xf0]  ;;  %v3022_v40 = vld [vmem:[#allocation9 + $0xdc] sm:$0xf0]  ;;  %v3013_v43 = vor.u32 %v3188_v36, %v3010_v37  ;;  %v3185_v47 = vld [vmem:[#allocation9 + $0x90] sm:$0xf0] }
 0x661   : > { %2177 = vmatpush.bf16.msra.mxu0 %v3021_v18  ;;  %v3192_v39 = vld [vmem:[#allocation9 + $0xcc] sm:$0xf]  ;;  %v2988_v44 = vld [vmem:[#allocation9 + $0x80] sm:$0xf]  ;;  %v2981_v45 = vor.u32 %v3184_v38, %v2980_v28  ;;  %v3183_v48 = vld [vmem:[#allocation9 + $0x84] sm:$0xf] }
 0x662   : > { %2205 = vmatpush.bf16.msra.mxu2 %v3029_v29  ;;  %2190 = vmatpush.bf16.msra.mxu1 %v3045_v33  ;;  %v3025_v46 = vor.u32 %v3192_v39, %v3022_v40  ;;  %v2990_v49 = vld [vmem:[#allocation9 + $0x94] sm:$0xf0]  ;;  %v3179_v50 = vld [vmem:[#allocation9 + $0x60] sm:$0xf0]  ;;  %v2940_v53 = vld [vmem:[#allocation9 + $0x28] sm:$0xf]  ;;  %v2989_v54 = vor.u32 %v3185_v47, %v2988_v44 }
 0x663   : > { %2219 = vmatpush.bf16.msra.mxu3 %v3033_v30  ;;  %v3187_v51 = vld [vmem:[#allocation9 + $0xa4] sm:$0xf]  ;;  %v3002_v52 = vld [vmem:[#allocation9 + $0xb4] sm:$0xf0]  ;;  %v2993_v55 = vor.u32 %v3183_v48, %v2990_v49  ;;  %v2961_v57 = vor.u32 %v3179_v50, %v2960_v41  ;;  %v3180_v59 = vld [vmem:[#allocation9 + $0x68] sm:$0xf0] }
 0x664   : > { %v2968_v56 = vld [vmem:[#allocation9 + $0x58] sm:$0xf]  ;;  %v3005_v58 = vor.u32 %v3187_v51, %v3002_v52  ;;  %v3178_v60 = vld [vmem:[#allocation9 + $0x5c] sm:$0xf]  ;;  %v2970_v61 = vld [vmem:[#allocation9 + $0x6c] sm:$0xf0] }
 0x665   : > { %2178 = vmatpush.bf16.msra.mxu0 %v3001_v32  ;;  %v3174_v62 = vld [vmem:[#allocation9 + $0x38] sm:$0xf0]  ;;  %v2982_v63 = vld [vmem:[#allocation9 + $0x8c] sm:$0xf0]  ;;  %v2920_v0 = vld [vmem:[#allocation9] sm:$0xf]  ;;  %v2969_v1 = vor.u32 %v3180_v59, %v2968_v56  ;;  %v2973_v2 = vor.u32 %v3178_v60, %v2970_v61 }
 0x666   : > { %2206 = vmatpush.bf16.msra.mxu2 %v3009_v42  ;;  %2191 = vmatpush.bf16.msra.mxu1 %v3025_v46  ;;  %v3182_v35 = vld [vmem:[#allocation9 + $0x7c] sm:$0xf]  ;;  %v2948_v3 = vld [vmem:[#allocation9 + $0x30] sm:$0xf]  ;;  %v2941_v4 = vor.u32 %v3174_v62, %v2940_v53  ;;  %v3175_v6 = vld [vmem:[#allocation9 + $0x40] sm:$0xf0] }
 0x667   : > { %2220 = vmatpush.bf16.msra.mxu3 %v3013_v43  ;;  %v2985_v5 = vor.u32 %v3182_v35, %v2982_v63  ;;  %v3173_v7 = vld [vmem:[#allocation9 + $0x34] sm:$0xf]  ;;  %v2950_v8 = vld [vmem:[#allocation9 + $0x44] sm:$0xf0]  ;;  %v3206_v13 = vld [vmem:[#allocation9 + $0x138] sm:$0xf0]  ;;  %v2949_v14 = vor.u32 %v3175_v6, %v2948_v3 }
 0x668   : > { %v3169_v9 = vld [vmem:[#allocation9 + $0x10] sm:$0xf0]  ;;  %v2962_v11 = vld [vmem:[#allocation9 + $0x64] sm:$0xf0]  ;;  %v2953_v15 = vor.u32 %v3173_v7, %v2950_v8  ;;  %v3170_v19 = vld [vmem:[#allocation9 + $0x18] sm:$0xf0] }
 0x669   : > { %2179 = vmatpush.bf16.msra.mxu0 %v2981_v45  ;;  %v3177_v10 = vld [vmem:[#allocation9 + $0x54] sm:$0xf]  ;;  %v3076_v12 = vld [vmem:[#allocation9 + $0x128] sm:$0xf]  ;;  %v2921_v16 = vor.u32 %v3169_v9, %v2920_v0  ;;  %v3168_v20 = vld [vmem:[#allocation9 + $0xc] sm:$0xf] }
 0x66a   : > { %2207 = vmatpush.bf16.msra.mxu2 %v2989_v54  ;;  %2192 = vmatpush.bf16.msra.mxu1 %v3005_v58  ;;  %v2965_v17 = vor.u32 %v3177_v10, %v2962_v11  ;;  %v2928_v18 = vld [vmem:[#allocation9 + $0x8] sm:$0xf]  ;;  %v3077_v21 = vor.u32 %v3206_v13, %v3076_v12  ;;  %v2930_v22 = vld [vmem:[#allocation9 + $0x1c] sm:$0xf0]  ;;  %v3172_v23 = vld [vmem:[#allocation9 + $0x2c] sm:$0xf] }
 0x66b   : > { %2221 = vmatpush.bf16.msra.mxu3 %v2993_v55  ;;  %v2942_v24 = vld [vmem:[#allocation9 + $0x3c] sm:$0xf0]  ;;  %v3201_v26 = vld [vmem:[#allocation9 + $0x110] sm:$0xf0]  ;;  %v3166_v27 = vld [vmem:[#allocation3] sm:$0xff]  ;;  %v2929_v28 = vor.u32 %v3170_v19, %v2928_v18  ;;  %v2933_v29 = vor.u32 %v3168_v20, %v2930_v22 }
 0x66c   : > { %v3056_v25 = vld [vmem:[#allocation9 + $0x100] sm:$0xf]  ;;  %v2945_v30 = vor.u32 %v3172_v23, %v2942_v24  ;;  %v3167_v32 = vld [vmem:[#allocation9 + $0x4] sm:$0xf]  ;;  %v2922_v33 = vld [vmem:[#allocation9 + $0x14] sm:$0xf0] }
 0x66d   : > { %2180 = vmatpush.bf16.msra.mxu0 %v2961_v57  ;;  %v3057_v31 = vor.u32 %v3201_v26, %v3056_v25  ;;  %v3036_v34 = vld [vmem:[#allocation9 + $0xd8] sm:$0xf]  ;;  %v3196_v36 = vld [vmem:[#allocation9 + $0xe8] sm:$0xf0]  ;;  %v2925_v37 = vor.u32 %v3167_v32, %v2922_v33  ;;  %v3016_v39 = vld [vmem:[#allocation9 + $0xb0] sm:$0xf] }
 0x66e   : > { %2208 = vmatpush.bf16.msra.mxu2 %v2969_v1  ;;  %2193 = vmatpush.bf16.msra.mxu1 %v2985_v5  ;;  %v3037_v38 = vor.u32 %v3196_v36, %v3036_v34  ;;  %v3191_v40 = vld [vmem:[#allocation9 + $0xc0] sm:$0xf0]  ;;  %v2996_v42 = vld [vmem:[#allocation9 + $0x88] sm:$0xf]  ;;  %v3186_v43 = vld [vmem:[#allocation9 + $0x98] sm:$0xf0] }
 0x66f   : > { %2222 = vmatpush.bf16.msra.mxu3 %v2973_v2  ;;  %v3017_v41 = vor.u32 %v3191_v40, %v3016_v39  ;;  %v2997_v44 = vor.u32 %v3186_v43, %v2996_v42  ;;  %v2976_v45 = vld [vmem:[#allocation9 + $0x60] sm:$0xf]  ;;  %v3181_v46 = vld [vmem:[#allocation9 + $0x70] sm:$0xf0]  ;;  %v2956_v48 = vld [vmem:[#allocation9 + $0x38] sm:$0xf] }
 0x670   : > { %v2977_v47 = vor.u32 %v3181_v46, %v2976_v45  ;;  %v3176_v49 = vld [vmem:[#allocation9 + $0x48] sm:$0xf0]  ;;  %v2936_v51 = vld [vmem:[#allocation9 + $0x10] sm:$0xf]  ;;  %v3171_v52 = vld [vmem:[#allocation9 + $0x20] sm:$0xf0] }
 0x671   : > { %2181 = vmatpush.bf16.msra.mxu0 %v2941_v4  ;;  %v2957_v50 = vor.u32 %v3176_v49, %v2956_v48  ;;  %v2937_v53 = vor.u32 %v3171_v52, %v2936_v51  ;;  %v1949_v54 = vld [vmem:[#allocation10] sm:$0x1f] }
 0x672   : > { %2209 = vmatpush.bf16.msra.mxu2 %v2949_v14  ;;  %2194 = vmatpush.bf16.msra.mxu1 %v2965_v17  ;;  %v1951_v55 = vperm.slane %v1949_v54, 0  ;;  %v1952_v58 = vperm.slane %v1949_v54, 1  ;;  %v1953_v59 = vperm.slane %v1949_v54, 2  ;;  %v1954_v60 = vperm.slane %v1949_v54, 3 }
 0x673   : > { %2223 = vmatpush.bf16.msra.mxu3 %v2953_v15  ;;  %v1955_v10 = vperm.slane %v1949_v54, 4 }
 0x675   : > { %2182 = vmatpush.bf16.msra.mxu0 %v2921_v16 }
 0x676   : > { %2210 = vmatpush.bf16.msra.mxu2 %v2929_v28  ;;  %2195 = vmatpush.bf16.msra.mxu1 %v2945_v30 }
 0x677   : > { %2224 = vmatpush.bf16.msra.mxu3 %v2933_v29 }
 0x678   : > { %2183 = vmatmul.bf16.vlgmr.msra.gmra.mxu0 %v3166_v27 }
 0x679   : > { %2231 = vmatpush.bf16.msrb.mxu0 %v3077_v21  ;;  %2211 = vmatmul.bf16.vlgmr.msra.gmra.mxu2 %v3166_v27 }
 0x67a   : > { %2225 = vmatmul.bf16.vlgmr.msra.gmra.mxu3 %v3166_v27  ;;  %2196 = vmatpush.bf16.msra.mxu1 %v2925_v37 }
 0x67d   : > { %2232 = vmatpush.bf16.msrb.mxu0 %v3057_v31  ;;  %2197 = vmatmul.bf16.vlgmr.msra.gmra.mxu1 %v3166_v27 }
 0x681   : > { %2233 = vmatpush.bf16.msrb.mxu0 %v3037_v38 }
 0x685   : > { %2234 = vmatpush.bf16.msrb.mxu0 %v3017_v41 }
 0x689   : > { %2235 = vmatpush.bf16.msrb.mxu0 %v2997_v44 }
 0x68d   : > { %2236 = vmatpush.bf16.msrb.mxu0 %v2977_v47 }
 0x691   : > { %2237 = vmatpush.bf16.msrb.mxu0 %v2957_v50 }
 0x695   : > { %2238 = vmatpush.bf16.msrb.mxu0 %v2937_v53 }
 0x698   : > { %2239 = vmatmul.bf16.vlgmr.msrb.gmra.mxu0 %v3166_v27 }
 0x6f5   : > { %v2184_v56 = vpop.f32.mrf.mxu0 }
 0x6f6   : > { %v2185_v57 = vadd.f32 %v2184_v56, %v1951_v55 }
 0x6f8   : > { %2245 = vst [vmem:[#allocation25] sm:$0xff] %v2185_v57 }
 0x6fa   : > { %v2198_v62 = vpop.f32.mrf.mxu1 }
 0x6fb   : > { %v2199_v63 = vadd.f32 %v2198_v62, %v1952_v58 }
 0x6fc   : > { %v2212_v0 = vpop.f32.mrf.mxu2 }
 0x6fd   : > { %v2186_v61 = vpop.f32.mrf.mxu0  ;;  %v2213_v1 = vadd.f32 %v2212_v0, %v1953_v59  ;;  %v2226_v2 = vpop.f32.mrf.mxu3  ;;  %2246 = vst [vmem:[#allocation25 + $0x8] sm:$0xff] %v2199_v63 }
 0x6fe   : > { %v2187_v35 = vadd.f32 %v2186_v61, %v1951_v55  ;;  %v2227_v3 = vadd.f32 %v2226_v2, %v1954_v60 }
 0x6ff   : > { %2247 = vst [vmem:[#allocation25 + $0x10] sm:$0xff] %v2213_v1 }
 0x700   : > { %2250 = vst [vmem:[#allocation25 + $0x28] sm:$0xff] %v2187_v35 }
 0x701   : > { %2248 = vst [vmem:[#allocation25 + $0x18] sm:$0xff] %v2227_v3 }
 0x702   : > { %v2200_v4 = vpop.f32.mrf.mxu1 }
 0x703   : > { %v2201_v5 = vadd.f32 %v2200_v4, %v1952_v58 }
 0x704   : > { %v2214_v6 = vpop.f32.mrf.mxu2 }
 0x705   : > { %v2215_v7 = vadd.f32 %v2214_v6, %v1953_v59  ;;  %v2228_v8 = vpop.f32.mrf.mxu3  ;;  %2251 = vst [vmem:[#allocation25 + $0x30] sm:$0xff] %v2201_v5 }
 0x706   : > { %v2229_v9 = vadd.f32 %v2228_v8, %v1954_v60 }
 0x707   : > { %2252 = vst [vmem:[#allocation25 + $0x38] sm:$0xff] %v2215_v7 }
 0x708   : > { %2253 = vst [vmem:[#allocation25 + $0x40] sm:$0xff] %v2229_v9 }
 0x715   : > { %v2240_v11 = vpop.f32.mrf.mxu0 }
 0x716   : > { %v2241_v12 = vadd.f32 %v2240_v11, %v1955_v10 }
 0x718   : > { %2249 = vst [vmem:[#allocation25 + $0x20] sm:$0xff] %v2241_v12 }
 0x71d   : > { %v2242_v13 = vpop.f32.mrf.mxu0 }
 0x71e   : > { %v2243_v14 = vadd.f32 %v2242_v13, %v1955_v10 }
 0x720   : > { %2254 = vst [vmem:[#allocation25 + $0x48] sm:$0xff] %v2243_v14 }
 0x721 PF: > { %p3349_p0 = scmp.eq.s32.totalorder %s4078_s24, 1  ;;  %s3970_s21 = smov [#allocation26]  }
 0x722   : > { %s2283_s0 = sshll.u32 %s3970_s21, 4  ;;  %s4325_s16 = sld [smem:[#allocation47_spill]]  ;;  %s2284_s0 = int_to_ptr.vmem [resolvable:$true] %s2283_s0 }
 0x723   : > { %s3971_s14 = smov 128   ;;  %s3972_s25 = smov 8  }
 0x724   : > { %s3973_s30 = smov [#allocation25]   ;;  %s4326_s28 = sld [smem:[#allocation46_spill]] }
 0x725   : > { %s2269_s18 = sshll.u32 %s3973_s30, 4  ;;  %s3974_s19 = smov 640   ;;  %s2270_s18 = int_to_ptr.vmem [resolvable:$true] %s2269_s18 }
 0x726   : > { %s3975_s22 = smov 40   ;;  %s4327_s27 = sld [smem:[#allocation48_spill]] }
 0x727   : > { %s3976_s21 = smov [#allocation28]  }
 0x728   : > { %s2285_s26 = sshll.u32 %s4325_s16, 4  ;;  %s2297_s20 = sshll.u32 %s3976_s21, 4  ;;  %s2286_s26 = int_to_ptr.hbm [resolvable:$true] %s2285_s26  ;;  %s2298_s20 = int_to_ptr.vmem [resolvable:$true] %s2297_s20 }
 0x729   : > { %3268 = dma.vmem_to_hbm [thread:$0]  (%p3349_p0), %s2284_s0, 256, %s2286_s26, [#allocation27], %s3971_s14, %s3971_s14, %s3972_s25  }
 0x72a   : > { %s2271_s15 = sshll.u32 %s4326_s28, 4  ;;  %s2272_s15 = int_to_ptr.hbm [resolvable:$true] %s2271_s15 }
 0x72b   : > { %3266 = dma.vmem_to_hbm [thread:$0]  (%p3349_p0), %s2270_s18, 1280, %s2272_s15, [#allocation6], %s3974_s19, %s3974_s19, %s3975_s22  }
 0x72c   : > { %s2299_s17 = sshll.u32 %s4327_s27, 4  ;;  %s2300_s17 = int_to_ptr.hbm [resolvable:$true] %s2299_s17 }
 0x72d   : > { %3270 = dma.vmem_to_hbm [thread:$0]  (%p3349_p0), %s2298_s20, 256, %s2300_s17, [#allocation27], %s3971_s14, %s3971_s14, %s3972_s25  }
 0x72e   : > { %3931 = dma.done.wait (%p3349_p0), [#allocation27], 512  }
 0x72f   : > { %3933 = vsyncadd (%p3349_p0), [#allocation27], 4294966784 }
 0x730 PF: > { %s4328_s0 = sadd.s32 4294967294, %s3948_s23  }
 0x731   : > { %p3355_p1 = scmp.eq.s32.totalorder %s4328_s0, 1 }
 0x733   : > { %p3319_p2 = pnand %p3355_p1, %p2567_p7 }
 0x735   : > { %p3320_p3 = pneg %p3319_p2 }
 0x737   : > { %3935 = dma.done.wait (%p3320_p3), [#allocation6], 1280  }
 0x738   : > { %3937 = vsyncadd (%p3320_p3), [#allocation6], 4294966016  ;;  %s44_s23 = sadd.s32 1, %s3948_s23   ;;  %s4329_s21 = sld [smem:[#allocation39_spill]] }
 0x739   : > { %p41_p4 = scmp.ge.s32.totalorder %s44_s23, 4   ;;  %s4330_s22 = sld [smem:[#allocation40_spill]] }
 0x73b   :  { %43 = sbr.rel (!%p41_p4) target bundleno = 23 (0x17), region = 226 }
 0x740   :  { %2331 = vsyncpa [#allocation5], 1 }
 0x741   :  { %2333 = vsyncpa [#allocation5 + $0x1], 1 }
 0x742   :  { %2334 = vsyncpa [#allocation8], 1 }
 0x743   :  { %2336 = vsyncpa [#allocation8 + $0x1], 1 }
 0x744   :  { %2337 = vsyncpa [#allocation11], 1 }
 0x745   :  { %2339 = vsyncpa [#allocation11 + $0x1], 1 }
 0x746   :  { %2340 = vsyncpa [#allocation14], 1 }
 0x747   :  { %2341 = vsyncpa [#allocation17], 1 }
 0x748   :  { %2342 = vsyncpa [#allocation20], 1 }
 0x749   :  { %2343 = vsyncpa [#allocation23], 1 }
 0x74a   :  { %2344 = vsyncpa [#allocation6], 1 }
 0x74b   :  { %2346 = vsyncpa [#allocation6 + $0x1], 1 }
 0x74c   :  { %2347 = vsyncpa [#allocation27], 1 }

</bundles_post_ra>
